<compile_context>
chip_gen: v5e
topology: v5e:2x2
jax: 0.10.0
libtpu: 0.0.40
codegen_flags: <defaults>
</compile_context>

<pallas_src>
import functools

import jax
import jax.numpy as jnp
from jax.experimental import pallas as pl
from jax.experimental.pallas import tpu as pltpu

HIDDEN = 512
OUT = 784  # 28 * 28


def _round_up(x, m):
    return (x + m - 1) // m * m


def decoder_kernel(z_ref, w1_ref, b1_ref, w2_ref, b2_ref, o_ref):
    # Hidden layer: [TB, Lp]bf16 @ [Lp, 512]bf16 -> f32 on the MXU.
    h = jnp.dot(z_ref[...], w1_ref[...], preferred_element_type=jnp.float32)
    h = jnp.maximum(h + b1_ref[...], 0.0)          # bias + relu in f32 (VPU)
    # Output layer: [TB, 512]bf16 @ [512, 784]bf16 -> f32 on the MXU.
    y = jnp.dot(h.astype(jnp.bfloat16), w2_ref[...],
                preferred_element_type=jnp.float32)
    y = y + b2_ref[...]                             # bias in f32
    # sigmoid(y) = 1 / (1 + exp(-y)); exp + approx reciprocal run on the EUP.
    s = pl.reciprocal(1.0 + jnp.exp(-y), approx=True)
    o_ref[...] = s.astype(o_ref.dtype)              # bf16 store (lane-dense-ish)


def decoder_forward_flat(z, w1_p, b1, w2, b2, *, block_b=512,
                         out_dtype=jnp.bfloat16):
    """Runs the two-layer MLP and returns the flat [B, 784] sigmoid output.

    z:    [B, latent] float
    w1_p: [latent_pad, 512] bf16 (zero-padded rows beyond latent)
    b1:   [1, 512] f32
    w2:   [512, 784] bf16
    b2:   [1, 784] f32
    """
    B, L = z.shape
    L_pad = w1_p.shape[0]
    assert w1_p.shape == (L_pad, HIDDEN) and L_pad >= L
    assert w2.shape == (HIDDEN, OUT)

    # Batch tile: balance tiles so the last one isn't mostly padding, keep it
    # a multiple of 8 sublanes and <= block_b (+7).
    n_tiles = max(1, -(-B // block_b))
    tb = _round_up(-(-B // n_tiles), 8)
    b_pad = _round_up(B, tb)

    # Lane-dense z: cast to bf16, pad latent to L_pad and batch to b_pad.
    z = z.astype(jnp.bfloat16)
    if b_pad != B or L_pad != L:
        z = jnp.pad(z, ((0, b_pad - B), (0, L_pad - L)))

    grid = (b_pad // tb,)
    out_bytes = jnp.dtype(out_dtype).itemsize
    cost = pl.CostEstimate(
        flops=2 * b_pad * (L_pad * HIDDEN + HIDDEN * OUT),
        transcendentals=2 * b_pad * OUT,  # exp + reciprocal per output elem
        bytes_accessed=(z.size * 2 + w1_p.size * 2 + w2.size * 2
                        + b1.size * 4 + b2.size * 4
                        + b_pad * OUT * out_bytes),
    )

    flat = pl.pallas_call(
        decoder_kernel,
        out_shape=jax.ShapeDtypeStruct((b_pad, OUT), out_dtype),
        grid=grid,
        in_specs=[
            pl.BlockSpec((tb, L_pad), lambda i: (i, 0)),       # z: per-tile DMA
            pl.BlockSpec((L_pad, HIDDEN), lambda i: (0, 0)),   # w1: resident
            pl.BlockSpec((1, HIDDEN), lambda i: (0, 0)),       # b1: resident
            pl.BlockSpec((HIDDEN, OUT), lambda i: (0, 0)),     # w2: resident
            pl.BlockSpec((1, OUT), lambda i: (0, 0)),          # b2: resident
        ],
        out_specs=pl.BlockSpec((tb, OUT), lambda i: (i, 0)),
        compiler_params=pltpu.CompilerParams(
            dimension_semantics=("parallel",)),
        cost_estimate=cost,
    )(z, w1_p, b1, w2, b2)

    if b_pad != B:
        flat = flat[:B]  # contiguous leading-dim slice only when padded
    return flat


def decoder_forward(z, w1_p, b1, w2, b2, *, block_b=512,
                    out_dtype=jnp.bfloat16):
    """Full Decoder.forward semantics: returns [B, 1, 28, 28]."""
    flat = decoder_forward_flat(z, w1_p, b1, w2, b2, block_b=block_b,
                                out_dtype=out_dtype)
    # The NCHW reshape forces a relayout (28 < 128 lanes); consumers that can
    # work on [B, 784] should call decoder_forward_flat directly.
    return flat.reshape((-1, 1, 28, 28))


def init_params(key, latent_dims):
    """Deterministic init mimicking nn.Linear's U(-1/sqrt(fan_in), 1/sqrt(fan_in)).
       Weights are stored [in, out] (transposed vs torch's [out, in])."""
    k1, k2, k3, k4 = jax.random.split(key, 4)
    bound1 = 1.0 / jnp.sqrt(latent_dims)
    bound2 = 1.0 / jnp.sqrt(512.0)
    w1_t = jax.random.uniform(k1, (latent_dims, HIDDEN), jnp.float32, -bound1, bound1)
    b1 = jax.random.uniform(k2, (1, HIDDEN), jnp.float32, -bound1, bound1)
    w2_t = jax.random.uniform(k3, (HIDDEN, OUT), jnp.float32, -bound2, bound2)
    b2 = jax.random.uniform(k4, (1, OUT), jnp.float32, -bound2, bound2)
    return w1_t, b1, w2_t, b2


def prepare_params(w1_t, b1, w2_t, b2):
    """Pad the latent (K) dim of w1 to a multiple of 128 with zero rows and
       cast weights to bf16 for the MXU; biases stay f32 for the epilogue."""
    L = w1_t.shape[0]
    L_pad = _round_up(L, 128)
    w1_p = jnp.pad(w1_t, ((0, L_pad - L), (0, 0))).astype(jnp.bfloat16)
    return (w1_p,
            b1.reshape(1, HIDDEN).astype(jnp.float32),
            w2_t.astype(jnp.bfloat16),
            b2.reshape(1, OUT).astype(jnp.float32))


if __name__ == "__main__":
    latent_dims = 32
    batch = 8

    key = jax.random.PRNGKey(0)
    kz, kp = jax.random.split(key)
    z = jax.random.normal(kz, (batch, latent_dims), dtype=jnp.float32)
    w1_t, b1, w2_t, b2 = init_params(kp, latent_dims)
    w1_p, b1_f, w2_b, b2_f = prepare_params(w1_t, b1, w2_t, b2)

    fwd = jax.jit(functools.partial(decoder_forward, block_b=512))
    out = fwd(z, w1_p, b1_f, w2_b, b2_f)
    jax.block_until_ready(out)

    # Plain-JAX reference with matching bf16 weight casts / f32 accumulation.
    zb = z.astype(jnp.bfloat16)
    h = jnp.maximum(
        jnp.dot(zb, w1_t.astype(jnp.bfloat16),
                preferred_element_type=jnp.float32) + b1, 0.0)
    y = jnp.dot(h.astype(jnp.bfloat16), w2_b,
                preferred_element_type=jnp.float32) + b2
    ref = jax.nn.sigmoid(y).reshape((-1, 1, 28, 28))

    assert out.shape == (batch, 1, 28, 28), out.shape
    err = float(jnp.max(jnp.abs(out.astype(jnp.float32) - ref)))
    # Tolerance covers bf16 output quantization + approx-reciprocal sigmoid.
    assert err < 2e-2, err

    print("KERNEL_OK")
</pallas_src>

<mosaic_0001>
module attributes {stable_mosaic.version = 11 : i64} {
  func.func @decoder_kernel(%arg0: i32, %arg1: memref<8x128xbf16, #tpu.memory_space<vmem>>, %arg2: memref<128x512xbf16, #tpu.memory_space<vmem>>, %arg3: memref<1x512xf32, #tpu.memory_space<vmem>>, %arg4: memref<512x784xbf16, #tpu.memory_space<vmem>>, %arg5: memref<1x784xf32, #tpu.memory_space<vmem>>, %arg6: memref<8x784xbf16, #tpu.memory_space<vmem>>) attributes {dimension_semantics = [#tpu.dimension_semantics<parallel>], iteration_bounds = array<i64: 1>, scalar_prefetch = 0 : i64, scratch_operands = 0 : i64, tpu.core_type = #tpu.core_type<tc>, window_params = [{transform_indices = @transform_0, window_bounds = array<i64: 8, 128>}, {pipeline_mode = #tpu.pipeline_mode<synchronous>, transform_indices = @transform_1, window_bounds = array<i64: 128, 512>}, {pipeline_mode = #tpu.pipeline_mode<synchronous>, transform_indices = @transform_2, window_bounds = array<i64: 1, 512>}, {pipeline_mode = #tpu.pipeline_mode<synchronous>, transform_indices = @transform_3, window_bounds = array<i64: 512, 784>}, {pipeline_mode = #tpu.pipeline_mode<synchronous>, transform_indices = @transform_4, window_bounds = array<i64: 1, 784>}, {transform_indices = @transform_5, window_bounds = array<i64: 8, 784>}]} {
    %c0 = arith.constant 0 : index
    %c0_0 = arith.constant 0 : index
    %0 = vector.load %arg1[%c0, %c0_0] : memref<8x128xbf16, #tpu.memory_space<vmem>>, vector<8x128xbf16>
    %c0_1 = arith.constant 0 : index
    %c0_2 = arith.constant 0 : index
    %1 = vector.load %arg2[%c0_1, %c0_2] : memref<128x512xbf16, #tpu.memory_space<vmem>>, vector<128x512xbf16>
    %cst = arith.constant dense<0.000000e+00> : vector<8x512xf32>
    %2 = tpu.matmul %0, %1, %cst {dimension_numbers = #tpu.dot_dimension_numbers<[1], [0], [0], [1], [0, 0, 1, 1], [], []>} : vector<8x128xbf16>, vector<128x512xbf16>, vector<8x512xf32> -> vector<8x512xf32>
    %c0_3 = arith.constant 0 : index
    %c0_4 = arith.constant 0 : index
    %3 = vector.load %arg3[%c0_3, %c0_4] : memref<1x512xf32, #tpu.memory_space<vmem>>, vector<1x512xf32>
    %4 = vector.broadcast %3 : vector<1x512xf32> to vector<8x512xf32>
    %5 = arith.addf %2, %4 : vector<8x512xf32>
    %cst_5 = arith.constant 0.000000e+00 : f32
    %6 = vector.broadcast %cst_5 : f32 to vector<8x512xf32>
    %7 = arith.maximumf %5, %6 : vector<8x512xf32>
    %8 = arith.truncf %7 : vector<8x512xf32> to vector<8x512xbf16>
    %c0_6 = arith.constant 0 : index
    %c0_7 = arith.constant 0 : index
    %9 = vector.load %arg4[%c0_6, %c0_7] : memref<512x784xbf16, #tpu.memory_space<vmem>>, vector<512x784xbf16>
    %cst_8 = arith.constant dense<0.000000e+00> : vector<8x784xf32>
    %10 = tpu.matmul %8, %9, %cst_8 {dimension_numbers = #tpu.dot_dimension_numbers<[1], [0], [0], [1], [0, 0, 1, 1], [], []>} : vector<8x512xbf16>, vector<512x784xbf16>, vector<8x784xf32> -> vector<8x784xf32>
    %c0_9 = arith.constant 0 : index
    %c0_10 = arith.constant 0 : index
    %11 = vector.load %arg5[%c0_9, %c0_10] : memref<1x784xf32, #tpu.memory_space<vmem>>, vector<1x784xf32>
    %12 = vector.broadcast %11 : vector<1x784xf32> to vector<8x784xf32>
    %13 = arith.addf %10, %12 : vector<8x784xf32>
    %cst_11 = arith.constant 0.000000e+00 : f32
    %14 = vector.broadcast %cst_11 : f32 to vector<8x784xf32>
    %15 = arith.subf %14, %13 : vector<8x784xf32>
    %16 = math.exp %15 : vector<8x784xf32>
    %cst_12 = arith.constant 1.000000e+00 : f32
    %17 = vector.broadcast %cst_12 : f32 to vector<8x784xf32>
    %18 = arith.addf %17, %16 : vector<8x784xf32>
    %19 = tpu.reciprocal %18 {approx = true} : vector<8x784xf32> -> vector<8x784xf32>
    %20 = arith.truncf %19 : vector<8x784xf32> to vector<8x784xbf16>
    %c0_13 = arith.constant 0 : index
    %c0_14 = arith.constant 0 : index
    %21 = vector.load %arg6[%c0_13, %c0_14] : memref<8x784xbf16, #tpu.memory_space<vmem>>, vector<8x784xbf16>
    tpu.vector_store %arg6[%c0_13, %c0_14], %20 {strides = array<i32>} : memref<8x784xbf16, #tpu.memory_space<vmem>>, vector<8x784xbf16>,
    return
  }
  func.func @transform_0(%arg0: i32) -> (i32, i32) {
    %c0_i32 = arith.constant 0 : i32
    %c0_i32_0 = arith.constant 0 : i32
    return %arg0, %c0_i32 : i32, i32
  }
  func.func @transform_1(%arg0: i32) -> (i32, i32) {
    %c0_i32 = arith.constant 0 : i32
    %c0_i32_0 = arith.constant 0 : i32
    %c0_i32_1 = arith.constant 0 : i32
    return %c0_i32, %c0_i32_0 : i32, i32
  }
  func.func @transform_2(%arg0: i32) -> (i32, i32) {
    %c0_i32 = arith.constant 0 : i32
    %c0_i32_0 = arith.constant 0 : i32
    %c0_i32_1 = arith.constant 0 : i32
    return %c0_i32, %c0_i32_0 : i32, i32
  }
  func.func @transform_3(%arg0: i32) -> (i32, i32) {
    %c0_i32 = arith.constant 0 : i32
    %c0_i32_0 = arith.constant 0 : i32
    %c0_i32_1 = arith.constant 0 : i32
    return %c0_i32, %c0_i32_0 : i32, i32
  }
  func.func @transform_4(%arg0: i32) -> (i32, i32) {
    %c0_i32 = arith.constant 0 : i32
    %c0_i32_0 = arith.constant 0 : i32
    %c0_i32_1 = arith.constant 0 : i32
    return %c0_i32, %c0_i32_0 : i32, i32
  }
  func.func @transform_5(%arg0: i32) -> (i32, i32) {
    %c0_i32 = arith.constant 0 : i32
    %c0_i32_0 = arith.constant 0 : i32
    return %arg0, %c0_i32 : i32, i32
  }
}

</mosaic_0001>

<bundles_post_ra>
// kernel: decoder_forward.1
= control target key start
LH: loop header
LB: loop body
LE: loop exit
PB: predicated region body
PF: predicated region fallthrough
CT: control target
= control target key end

     0   :  { %vm2113_vm0 = vcmask 125952   ;;  %s5059_s1 = inlined_call_operand.vmem [shape: bf16[128,512], index: 1, kind: input, shape index: {}]   ;;  %s5060_s3 = inlined_call_operand.vmem [shape: bf16[512,784], index: 3, kind: input, shape index: {}]   ;;  %s5061_s0 = inlined_call_operand.vmem [shape: bf16[8,128], index: 0, kind: input, shape index: {}]   ;;  %s5062_s2 = inlined_call_operand.vmem [shape: f32[1,512], index: 2, kind: input, shape index: {}]   ;;  %s5063_s4 = inlined_call_operand.vmem [shape: f32[1,784], index: 4, kind: input, shape index: {}]   ;;  %s5064_s5 = inlined_call_operand.vmem [shape: bf16[8,784], index: 5, kind: output, shape index: {}]  }
   0x1   :  { %v2233_v0 = vld [vmem:[%s5059_s1 + $0xe0] sm:$0xf]  ;;  %v3173_v1 = vld [vmem:[%s5059_s1 + $0xec] sm:$0xf0]  ;;  %v3171_v2 = vld [vmem:[%s5059_s1 + $0xe4] sm:$0xf] }
   0x2   :  { %v2234_v3 = vor.u32 %v3173_v1, %v2233_v0  ;;  %v2235_v4 = vld [vmem:[%s5059_s1 + $0xf0] sm:$0xf0]  ;;  %v2241_v5 = vld [vmem:[%s5059_s1 + $0xe8] sm:$0xf]  ;;  %v3174_v6 = vld [vmem:[%s5059_s1 + $0xf4] sm:$0xf0] }
   0x3   :  { %v2238_v7 = vor.u32 %v3171_v2, %v2235_v4  ;;  %v2242_v8 = vor.u32 %v3174_v6, %v2241_v5  ;;  %v3172_v9 = vld [vmem:[%s5059_s1 + $0xec] sm:$0xf]  ;;  %v2243_v10 = vld [vmem:[%s5059_s1 + $0xf8] sm:$0xf0]  ;;  %v2217_v11 = vld [vmem:[%s5059_s1 + $0xc0] sm:$0xf] }
   0x4   :  { %223 = vmatpush.bf16.msra.mxu0 %v2234_v3  ;;  %v2246_v12 = vor.u32 %v3172_v9, %v2243_v10  ;;  %v3169_v13 = vld [vmem:[%s5059_s1 + $0xcc] sm:$0xf0]  ;;  %v3167_v14 = vld [vmem:[%s5059_s1 + $0xc4] sm:$0xf]  ;;  %v2219_v15 = vld [vmem:[%s5059_s1 + $0xd0] sm:$0xf0] }
   0x5   :  { %236 = vmatpush.bf16.msra.mxu1 %v2238_v7  ;;  %249 = vmatpush.bf16.msra.mxu2 %v2242_v8  ;;  %v2218_v16 = vor.u32 %v3169_v13, %v2217_v11  ;;  %v2222_v17 = vor.u32 %v3167_v14, %v2219_v15  ;;  %v2225_v18 = vld [vmem:[%s5059_s1 + $0xc8] sm:$0xf]  ;;  %v3170_v19 = vld [vmem:[%s5059_s1 + $0xd4] sm:$0xf0]  ;;  %v3168_v20 = vld [vmem:[%s5059_s1 + $0xcc] sm:$0xf] }
   0x6   :  { %262 = vmatpush.bf16.msra.mxu3 %v2246_v12  ;;  %v2226_v21 = vor.u32 %v3170_v19, %v2225_v18  ;;  %v2227_v22 = vld [vmem:[%s5059_s1 + $0xd8] sm:$0xf0]  ;;  %v2201_v23 = vld [vmem:[%s5059_s1 + $0xa0] sm:$0xf]  ;;  %v3165_v24 = vld [vmem:[%s5059_s1 + $0xac] sm:$0xf0] }
   0x7   :  { %v2230_v25 = vor.u32 %v3168_v20, %v2227_v22  ;;  %v3163_v26 = vld [vmem:[%s5059_s1 + $0xa4] sm:$0xf]  ;;  %v2203_v27 = vld [vmem:[%s5059_s1 + $0xb0] sm:$0xf0]  ;;  %v2209_v28 = vld [vmem:[%s5059_s1 + $0xa8] sm:$0xf]  ;;  %v2202_v29 = vor.u32 %v3165_v24, %v2201_v23 }
   0x8   :  { %224 = vmatpush.bf16.msra.mxu0 %v2218_v16  ;;  %v3166_v30 = vld [vmem:[%s5059_s1 + $0xb4] sm:$0xf0]  ;;  %v3164_v31 = vld [vmem:[%s5059_s1 + $0xac] sm:$0xf]  ;;  %v2211_v32 = vld [vmem:[%s5059_s1 + $0xb8] sm:$0xf0]  ;;  %v2206_v33 = vor.u32 %v3163_v26, %v2203_v27 }
   0x9   :  { %237 = vmatpush.bf16.msra.mxu1 %v2222_v17  ;;  %250 = vmatpush.bf16.msra.mxu2 %v2226_v21  ;;  %v2210_v34 = vor.u32 %v3166_v30, %v2209_v28  ;;  %v2185_v35 = vld [vmem:[%s5059_s1 + $0x80] sm:$0xf]  ;;  %v3161_v36 = vld [vmem:[%s5059_s1 + $0x8c] sm:$0xf0]  ;;  %v3159_v37 = vld [vmem:[%s5059_s1 + $0x84] sm:$0xf]  ;;  %v2214_v38 = vor.u32 %v3164_v31, %v2211_v32 }
   0xa   :  { %263 = vmatpush.bf16.msra.mxu3 %v2230_v25  ;;  %v2187_v39 = vld [vmem:[%s5059_s1 + $0x90] sm:$0xf0]  ;;  %v2193_v40 = vld [vmem:[%s5059_s1 + $0x88] sm:$0xf]  ;;  %v3162_v41 = vld [vmem:[%s5059_s1 + $0x94] sm:$0xf0]  ;;  %v2186_v44 = vor.u32 %v3161_v36, %v2185_v35 }
   0xb   :  { %v3160_v42 = vld [vmem:[%s5059_s1 + $0x8c] sm:$0xf]  ;;  %v2195_v43 = vld [vmem:[%s5059_s1 + $0x98] sm:$0xf0]  ;;  %v2190_v45 = vor.u32 %v3159_v37, %v2187_v39  ;;  %v2194_v46 = vor.u32 %v3162_v41, %v2193_v40  ;;  %v2169_v47 = vld [vmem:[%s5059_s1 + $0x60] sm:$0xf] }
   0xc   :  { %225 = vmatpush.bf16.msra.mxu0 %v2202_v29  ;;  %v3157_v48 = vld [vmem:[%s5059_s1 + $0x6c] sm:$0xf0]  ;;  %v3155_v49 = vld [vmem:[%s5059_s1 + $0x64] sm:$0xf]  ;;  %v2198_v50 = vor.u32 %v3160_v42, %v2195_v43  ;;  %v2171_v51 = vld [vmem:[%s5059_s1 + $0x70] sm:$0xf0] }
   0xd   :  { %238 = vmatpush.bf16.msra.mxu1 %v2206_v33  ;;  %251 = vmatpush.bf16.msra.mxu2 %v2210_v34  ;;  %v2177_v52 = vld [vmem:[%s5059_s1 + $0x68] sm:$0xf]  ;;  %v3158_v53 = vld [vmem:[%s5059_s1 + $0x74] sm:$0xf0]  ;;  %v3156_v54 = vld [vmem:[%s5059_s1 + $0x6c] sm:$0xf]  ;;  %v2170_v56 = vor.u32 %v3157_v48, %v2169_v47  ;;  %v2174_v57 = vor.u32 %v3155_v49, %v2171_v51 }
   0xe   :  { %264 = vmatpush.bf16.msra.mxu3 %v2214_v38  ;;  %v2179_v55 = vld [vmem:[%s5059_s1 + $0x78] sm:$0xf0]  ;;  %v2178_v58 = vor.u32 %v3158_v53, %v2177_v52  ;;  %v2153_v59 = vld [vmem:[%s5059_s1 + $0x40] sm:$0xf]  ;;  %v3153_v60 = vld [vmem:[%s5059_s1 + $0x4c] sm:$0xf0] }
   0xf   :  { %v3151_v61 = vld [vmem:[%s5059_s1 + $0x44] sm:$0xf]  ;;  %v2182_v62 = vor.u32 %v3156_v54, %v2179_v55  ;;  %v2155_v63 = vld [vmem:[%s5059_s1 + $0x50] sm:$0xf0]  ;;  %v2161_v0 = vld [vmem:[%s5059_s1 + $0x48] sm:$0xf]  ;;  %v2154_v4 = vor.u32 %v3153_v60, %v2153_v59 }
  0x10   :  { %226 = vmatpush.bf16.msra.mxu0 %v2186_v44  ;;  %v3154_v1 = vld [vmem:[%s5059_s1 + $0x54] sm:$0xf0]  ;;  %v3152_v2 = vld [vmem:[%s5059_s1 + $0x4c] sm:$0xf]  ;;  %v2163_v3 = vld [vmem:[%s5059_s1 + $0x58] sm:$0xf0]  ;;  %v2158_v5 = vor.u32 %v3151_v61, %v2155_v63 }
  0x11   :  { %239 = vmatpush.bf16.msra.mxu1 %v2190_v45  ;;  %252 = vmatpush.bf16.msra.mxu2 %v2194_v46  ;;  %v2162_v6 = vor.u32 %v3154_v1, %v2161_v0  ;;  %v2137_v7 = vld [vmem:[%s5059_s1 + $0x20] sm:$0xf]  ;;  %v3149_v8 = vld [vmem:[%s5059_s1 + $0x2c] sm:$0xf0]  ;;  %v3147_v9 = vld [vmem:[%s5059_s1 + $0x24] sm:$0xf]  ;;  %v2166_v10 = vor.u32 %v3152_v2, %v2163_v3 }
  0x12   :  { %265 = vmatpush.bf16.msra.mxu3 %v2198_v50  ;;  %v2139_v11 = vld [vmem:[%s5059_s1 + $0x30] sm:$0xf0]  ;;  %v2145_v12 = vld [vmem:[%s5059_s1 + $0x28] sm:$0xf]  ;;  %v3150_v13 = vld [vmem:[%s5059_s1 + $0x34] sm:$0xf0]  ;;  %v2138_v16 = vor.u32 %v3149_v8, %v2137_v7 }
  0x13   :  { %v3148_v14 = vld [vmem:[%s5059_s1 + $0x2c] sm:$0xf]  ;;  %v2147_v15 = vld [vmem:[%s5059_s1 + $0x38] sm:$0xf0]  ;;  %v2121_v17 = vld [vmem:[%s5059_s1] sm:$0xf]  ;;  %v2142_v18 = vor.u32 %v3147_v9, %v2139_v11  ;;  %v2146_v19 = vor.u32 %v3150_v13, %v2145_v12 }
  0x14   :  { %227 = vmatpush.bf16.msra.mxu0 %v2170_v56  ;;  %v3145_v20 = vld [vmem:[%s5059_s1 + $0xc] sm:$0xf0]  ;;  %v3143_v21 = vld [vmem:[%s5059_s1 + $0x4] sm:$0xf]  ;;  %v2123_v22 = vld [vmem:[%s5059_s1 + $0x10] sm:$0xf0]  ;;  %v2150_v23 = vor.u32 %v3148_v14, %v2147_v15 }
  0x15   :  { %240 = vmatpush.bf16.msra.mxu1 %v2174_v57  ;;  %253 = vmatpush.bf16.msra.mxu2 %v2178_v58  ;;  %v2129_v24 = vld [vmem:[%s5059_s1 + $0x8] sm:$0xf]  ;;  %v3146_v25 = vld [vmem:[%s5059_s1 + $0x14] sm:$0xf0]  ;;  %v3144_v26 = vld [vmem:[%s5059_s1 + $0xc] sm:$0xf]  ;;  %v2122_v30 = vor.u32 %v3145_v20, %v2121_v17  ;;  %v2126_v33 = vor.u32 %v3143_v21, %v2123_v22 }
  0x16   :  { %266 = vmatpush.bf16.msra.mxu3 %v2182_v62  ;;  %v2131_v27 = vld [vmem:[%s5059_s1 + $0x18] sm:$0xf0]  ;;  %v2445_v28 = vld [vmem:[%s5060_s3 + $0x188] sm:$0xf]  ;;  %v3227_v29 = vld [vmem:[%s5060_s3 + $0x1a0] sm:$0xf0]  ;;  %v2130_v34 = vor.u32 %v3146_v25, %v2129_v24 }
  0x17   :  { %v2669_v31 = vld [vmem:[%s5060_s3 + $0x348] sm:$0xf]  ;;  %v3283_v32 = vld [vmem:[%s5060_s3 + $0x360] sm:$0xf0]  ;;  %v2134_v35 = vor.u32 %v3144_v26, %v2131_v27  ;;  %v2446_v36 = vor.u32 %v3227_v29, %v2445_v28  ;;  %v2417_v37 = vld [vmem:[%s5060_s3 + $0x150] sm:$0xf] }
  0x18   :  { %228 = vmatpush.bf16.msra.mxu0 %v2154_v4  ;;  %v2893_v38 = vld [vmem:[%s5060_s3 + $0x508] sm:$0xf]  ;;  %v3339_v39 = vld [vmem:[%s5060_s3 + $0x520] sm:$0xf0]  ;;  %v2670_v40 = vor.u32 %v3283_v32, %v2669_v31  ;;  %v3220_v41 = vld [vmem:[%s5060_s3 + $0x168] sm:$0xf0] }
  0x19   :  { %241 = vmatpush.bf16.msra.mxu1 %v2158_v5  ;;  %254 = vmatpush.bf16.msra.mxu2 %v2162_v6  ;;  %v3117_v42 = vld [vmem:[%s5060_s3 + $0x6c8] sm:$0xf]  ;;  %v3395_v43 = vld [vmem:[%s5060_s3 + $0x6e0] sm:$0xf0]  ;;  %v20_v44 = vld [vmem:[%s5061_s0] sm:$0xf]  ;;  %v2894_v47 = vor.u32 %v3339_v39, %v2893_v38  ;;  %v2418_v48 = vor.u32 %v3220_v41, %v2417_v37 }
  0x1a   :  { %267 = vmatpush.bf16.msra.mxu3 %v2166_v10  ;;  %v2641_v45 = vld [vmem:[%s5060_s3 + $0x310] sm:$0xf]  ;;  %v3276_v46 = vld [vmem:[%s5060_s3 + $0x328] sm:$0xf0]  ;;  %v3118_v49 = vor.u32 %v3395_v43, %v3117_v42  ;;  %v2389_v50 = vld [vmem:[%s5060_s3 + $0x118] sm:$0xf] }
  0x1b   :  { %v2865_v51 = vld [vmem:[%s5060_s3 + $0x4d0] sm:$0xf]  ;;  %v3332_v52 = vld [vmem:[%s5060_s3 + $0x4e8] sm:$0xf0]  ;;  %v2642_v53 = vor.u32 %v3276_v46, %v2641_v45  ;;  %v3213_v54 = vld [vmem:[%s5060_s3 + $0x130] sm:$0xf0] }
  0x1c   :  { %229 = vmatpush.bf16.msra.mxu0 %v2138_v16  ;;  %v3089_v55 = vld [vmem:[%s5060_s3 + $0x690] sm:$0xf]  ;;  %v3388_v56 = vld [vmem:[%s5060_s3 + $0x6a8] sm:$0xf0]  ;;  %v2613_v57 = vld [vmem:[%s5060_s3 + $0x2d8] sm:$0xf]  ;;  %v2866_v59 = vor.u32 %v3332_v52, %v2865_v51  ;;  %v2390_v60 = vor.u32 %v3213_v54, %v2389_v50 }
  0x1d   :  { %242 = vmatpush.bf16.msra.mxu1 %v2142_v18  ;;  %255 = vmatpush.bf16.msra.mxu2 %v2146_v19  ;;  %v3269_v58 = vld [vmem:[%s5060_s3 + $0x2f0] sm:$0xf0]  ;;  %v3090_v61 = vor.u32 %v3388_v56, %v3089_v55  ;;  %v2361_v62 = vld [vmem:[%s5060_s3 + $0xe0] sm:$0xf]  ;;  %v2837_v63 = vld [vmem:[%s5060_s3 + $0x498] sm:$0xf] }
  0x1e   :  { %268 = vmatpush.bf16.msra.mxu3 %v2150_v23  ;;  %v3325_v0 = vld [vmem:[%s5060_s3 + $0x4b0] sm:$0xf0]  ;;  %v2614_v1 = vor.u32 %v3269_v58, %v2613_v57  ;;  %v3206_v2 = vld [vmem:[%s5060_s3 + $0xf8] sm:$0xf0]  ;;  %v3061_v3 = vld [vmem:[%s5060_s3 + $0x658] sm:$0xf] }
  0x1f   :  { %v3381_v4 = vld [vmem:[%s5060_s3 + $0x670] sm:$0xf0]  ;;  %v2585_v5 = vld [vmem:[%s5060_s3 + $0x2a0] sm:$0xf]  ;;  %v3262_v6 = vld [vmem:[%s5060_s3 + $0x2b8] sm:$0xf0]  ;;  %v2838_v7 = vor.u32 %v3325_v0, %v2837_v63  ;;  %v2362_v8 = vor.u32 %v3206_v2, %v2361_v62 }
  0x20   :  { %230 = vmatpush.bf16.msra.mxu0 %v2122_v30  ;;  %v3062_v9 = vor.u32 %v3381_v4, %v3061_v3  ;;  %v2333_v10 = vld [vmem:[%s5060_s3 + $0xa8] sm:$0xf]  ;;  %v2809_v11 = vld [vmem:[%s5060_s3 + $0x460] sm:$0xf]  ;;  %v3318_v12 = vld [vmem:[%s5060_s3 + $0x478] sm:$0xf0]  ;;  %v2586_v13 = vor.u32 %v3262_v6, %v2585_v5 }
  0x21   :  { %243 = vmatpush.bf16.msra.mxu1 %v2126_v33  ;;  %256 = vmatpush.bf16.msra.mxu2 %v2130_v34  ;;  %v3199_v14 = vld [vmem:[%s5060_s3 + $0xc0] sm:$0xf0]  ;;  %v3033_v15 = vld [vmem:[%s5060_s3 + $0x620] sm:$0xf]  ;;  %v3374_v16 = vld [vmem:[%s5060_s3 + $0x638] sm:$0xf0]  ;;  %v2810_v19 = vor.u32 %v3318_v12, %v2809_v11 }
  0x22   :  { %269 = vmatpush.bf16.msra.mxu3 %v2134_v35  ;;  %v2557_v17 = vld [vmem:[%s5060_s3 + $0x268] sm:$0xf]  ;;  %v3255_v18 = vld [vmem:[%s5060_s3 + $0x280] sm:$0xf0]  ;;  %v2334_v20 = vor.u32 %v3199_v14, %v2333_v10  ;;  %v3034_v21 = vor.u32 %v3374_v16, %v3033_v15  ;;  %v2305_v22 = vld [vmem:[%s5060_s3 + $0x70] sm:$0xf] }
  0x23   :  { %231 = vmatmul.bf16.vlgmr.msra.gmra.mxu0 %v20_v44  ;;  %v2781_v23 = vld [vmem:[%s5060_s3 + $0x428] sm:$0xf]  ;;  %v3311_v24 = vld [vmem:[%s5060_s3 + $0x440] sm:$0xf0]  ;;  %v2558_v25 = vor.u32 %v3255_v18, %v2557_v17  ;;  %v3192_v26 = vld [vmem:[%s5060_s3 + $0x88] sm:$0xf0] }
  0x24   :  { %1707 = vmatpush.bf16.msrb.mxu0 %v2446_v36  ;;  %244 = vmatmul.bf16.vlgmr.msra.gmra.mxu1 %v20_v44  ;;  %v3005_v27 = vld [vmem:[%s5060_s3 + $0x5e8] sm:$0xf]  ;;  %v3367_v28 = vld [vmem:[%s5060_s3 + $0x600] sm:$0xf0]  ;;  %v2529_v29 = vld [vmem:[%s5060_s3 + $0x230] sm:$0xf]  ;;  %v2782_v31 = vor.u32 %v3311_v24, %v2781_v23  ;;  %v2306_v32 = vor.u32 %v3192_v26, %v2305_v22 }
  0x25   :  { %1720 = vmatpush.bf16.msrb.mxu1 %v2670_v40  ;;  %257 = vmatmul.bf16.vlgmr.msra.gmra.mxu2 %v20_v44  ;;  %v3248_v30 = vld [vmem:[%s5060_s3 + $0x248] sm:$0xf0]  ;;  %v3006_v33 = vor.u32 %v3367_v28, %v3005_v27  ;;  %v2277_v34 = vld [vmem:[%s5060_s3 + $0x38] sm:$0xf]  ;;  %v2753_v35 = vld [vmem:[%s5060_s3 + $0x3f0] sm:$0xf] }
  0x26   :  { %270 = vmatmul.bf16.vlgmr.msra.gmra.mxu3 %v20_v44  ;;  %1733 = vmatpush.bf16.msrb.mxu2 %v2894_v47  ;;  %v3304_v36 = vld [vmem:[%s5060_s3 + $0x408] sm:$0xf0]  ;;  %v2530_v37 = vor.u32 %v3248_v30, %v2529_v29  ;;  %v3185_v38 = vld [vmem:[%s5060_s3 + $0x50] sm:$0xf0]  ;;  %v2977_v39 = vld [vmem:[%s5060_s3 + $0x5b0] sm:$0xf] }
  0x27   :  { %1746 = vmatpush.bf16.msrb.mxu3 %v3118_v49  ;;  %v3360_v40 = vld [vmem:[%s5060_s3 + $0x5c8] sm:$0xf0]  ;;  %v2501_v41 = vld [vmem:[%s5060_s3 + $0x1f8] sm:$0xf]  ;;  %v3241_v42 = vld [vmem:[%s5060_s3 + $0x210] sm:$0xf0]  ;;  %v2754_v43 = vor.u32 %v3304_v36, %v2753_v35  ;;  %v2278_v45 = vor.u32 %v3185_v38, %v2277_v34 }
  0x28   :  { %1708 = vmatpush.bf16.msrb.mxu0 %v2418_v48  ;;  %v2249_v44 = vld [vmem:[%s5060_s3] sm:$0xf]  ;;  %v2978_v46 = vor.u32 %v3360_v40, %v2977_v39  ;;  %v3178_v47 = vld [vmem:[%s5060_s3 + $0x18] sm:$0xf0]  ;;  %v2725_v48 = vld [vmem:[%s5060_s3 + $0x3b8] sm:$0xf]  ;;  %v2502_v50 = vor.u32 %v3241_v42, %v2501_v41 }
  0x29   :  { %1721 = vmatpush.bf16.msrb.mxu1 %v2642_v53  ;;  %v3297_v49 = vld [vmem:[%s5060_s3 + $0x3d0] sm:$0xf0]  ;;  %v2473_v51 = vld [vmem:[%s5060_s3 + $0x1c0] sm:$0xf]  ;;  %v2949_v52 = vld [vmem:[%s5060_s3 + $0x578] sm:$0xf] }
  0x2a   :  { %1734 = vmatpush.bf16.msrb.mxu2 %v2866_v59  ;;  %v3353_v53 = vld [vmem:[%s5060_s3 + $0x590] sm:$0xf0]  ;;  %v3234_v54 = vld [vmem:[%s5060_s3 + $0x1d8] sm:$0xf0]  ;;  %v3224_v55 = vld [vmem:[%s5060_s3 + $0x18c] sm:$0xf]  ;;  %v2726_v59 = vor.u32 %v3297_v49, %v2725_v48 }
  0x2b   :  { %1747 = vmatpush.bf16.msrb.mxu3 %v3090_v61  ;;  %v2447_v56 = vld [vmem:[%s5060_s3 + $0x1a4] sm:$0xf0]  ;;  %v3280_v57 = vld [vmem:[%s5060_s3 + $0x34c] sm:$0xf]  ;;  %v2950_v61 = vor.u32 %v3353_v53, %v2949_v52  ;;  %v3217_v62 = vld [vmem:[%s5060_s3 + $0x154] sm:$0xf]  ;;  %v2474_v2 = vor.u32 %v3234_v54, %v2473_v51 }
  0x2c   :  { %1709 = vmatpush.bf16.msrb.mxu0 %v2390_v60  ;;  %v2671_v58 = vld [vmem:[%s5060_s3 + $0x364] sm:$0xf0]  ;;  %v2250_v60 = vor.u32 %v3178_v47, %v2249_v44  ;;  %v2697_v63 = vld [vmem:[%s5060_s3 + $0x380] sm:$0xf]  ;;  %v3290_v0 = vld [vmem:[%s5060_s3 + $0x398] sm:$0xf0]  ;;  %v2450_v3 = vor.u32 %v3224_v55, %v2447_v56 }
  0x2d   :  { %1722 = vmatpush.bf16.msrb.mxu1 %v2614_v1  ;;  %v2921_v1 = vld [vmem:[%s5060_s3 + $0x540] sm:$0xf]  ;;  %v3346_v4 = vld [vmem:[%s5060_s3 + $0x558] sm:$0xf0]  ;;  %v3336_v5 = vld [vmem:[%s5060_s3 + $0x50c] sm:$0xf] }
  0x2e   :  { %1735 = vmatpush.bf16.msrb.mxu2 %v2838_v7  ;;  %v2895_v6 = vld [vmem:[%s5060_s3 + $0x524] sm:$0xf0]  ;;  %v2674_v7 = vor.u32 %v3280_v57, %v2671_v58  ;;  %v3273_v11 = vld [vmem:[%s5060_s3 + $0x314] sm:$0xf]  ;;  %v2643_v12 = vld [vmem:[%s5060_s3 + $0x32c] sm:$0xf0]  ;;  %v2922_v14 = vor.u32 %v3346_v4, %v2921_v1 }
  0x2f   :  { %1748 = vmatpush.bf16.msrb.mxu3 %v3062_v9  ;;  %v3392_v9 = vld [vmem:[%s5060_s3 + $0x6cc] sm:$0xf]  ;;  %v3119_v10 = vld [vmem:[%s5060_s3 + $0x6e4] sm:$0xf0]  ;;  %v2898_v15 = vor.u32 %v3336_v5, %v2895_v6  ;;  %v3210_v18 = vld [vmem:[%s5060_s3 + $0x11c] sm:$0xf] }
  0x30   :  { %1710 = vmatpush.bf16.msrb.mxu0 %v2362_v8  ;;  %v2419_v8 = vld [vmem:[%s5060_s3 + $0x16c] sm:$0xf0]  ;;  %v3122_v17 = vor.u32 %v3392_v9, %v3119_v10  ;;  %v2391_v22 = vld [vmem:[%s5060_s3 + $0x134] sm:$0xf0]  ;;  %v3385_v23 = vld [vmem:[%s5060_s3 + $0x694] sm:$0xf] }
  0x31   :  { %1723 = vmatpush.bf16.msrb.mxu1 %v2586_v13  ;;  %v2698_v13 = vor.u32 %v3290_v0, %v2697_v63  ;;  %v2422_v16 = vor.u32 %v3217_v62, %v2419_v8  ;;  %v3091_v24 = vld [vmem:[%s5060_s3 + $0x6ac] sm:$0xf0]  ;;  %v2615_v26 = vld [vmem:[%s5060_s3 + $0x2f4] sm:$0xf0]  ;;  %v2394_v28 = vor.u32 %v3210_v18, %v2391_v22  ;;  %v3203_v30 = vld [vmem:[%s5060_s3 + $0xe4] sm:$0xf] }
  0x32   :  { %1736 = vmatpush.bf16.msrb.mxu2 %v2810_v19  ;;  %v3329_v19 = vld [vmem:[%s5060_s3 + $0x4d4] sm:$0xf]  ;;  %v3094_v29 = vor.u32 %v3385_v23, %v3091_v24  ;;  %v2363_v34 = vld [vmem:[%s5060_s3 + $0xfc] sm:$0xf0]  ;;  %v3378_v35 = vld [vmem:[%s5060_s3 + $0x65c] sm:$0xf] }
  0x33   :  { %1749 = vmatpush.bf16.msrb.mxu3 %v3034_v21  ;;  %v2646_v21 = vor.u32 %v3273_v11, %v2643_v12  ;;  %v3063_v36 = vld [vmem:[%s5060_s3 + $0x674] sm:$0xf0]  ;;  %v2587_v38 = vld [vmem:[%s5060_s3 + $0x2bc] sm:$0xf0]  ;;  %v2366_v40 = vor.u32 %v3203_v30, %v2363_v34  ;;  %v3196_v42 = vld [vmem:[%s5060_s3 + $0xac] sm:$0xf] }
  0x34   :  { %1711 = vmatpush.bf16.msrb.mxu0 %v2334_v20  ;;  %v2867_v20 = vld [vmem:[%s5060_s3 + $0x4ec] sm:$0xf0]  ;;  %v3066_v41 = vor.u32 %v3378_v35, %v3063_v36  ;;  %v2811_v44 = vld [vmem:[%s5060_s3 + $0x47c] sm:$0xf0]  ;;  %v3371_v47 = vld [vmem:[%s5060_s3 + $0x624] sm:$0xf] }
  0x35   :  { %1724 = vmatpush.bf16.msrb.mxu1 %v2558_v25  ;;  %v3266_v25 = vld [vmem:[%s5060_s3 + $0x2dc] sm:$0xf]  ;;  %v2870_v27 = vor.u32 %v3329_v19, %v2867_v20  ;;  %v3035_v48 = vld [vmem:[%s5060_s3 + $0x63c] sm:$0xf0]  ;;  %v3252_v49 = vld [vmem:[%s5060_s3 + $0x26c] sm:$0xf] }
  0x36   :  { %1737 = vmatpush.bf16.msrb.mxu2 %v2782_v31  ;;  %v3322_v31 = vld [vmem:[%s5060_s3 + $0x49c] sm:$0xf]  ;;  %v3038_v53 = vor.u32 %v3371_v47, %v3035_v48  ;;  %v3189_v55 = vld [vmem:[%s5060_s3 + $0x74] sm:$0xf]  ;;  %v2307_v56 = vld [vmem:[%s5060_s3 + $0x8c] sm:$0xf0] }
  0x37   :  { %1750 = vmatpush.bf16.msrb.mxu3 %v3006_v33  ;;  %v2618_v33 = vor.u32 %v3266_v25, %v2615_v26  ;;  %v3245_v57 = vld [vmem:[%s5060_s3 + $0x234] sm:$0xf]  ;;  %v2531_v58 = vld [vmem:[%s5060_s3 + $0x24c] sm:$0xf0]  ;;  %v2783_v62 = vld [vmem:[%s5060_s3 + $0x444] sm:$0xf0] }
  0x38   :  { %1712 = vmatpush.bf16.msrb.mxu0 %v2306_v32  ;;  %v2839_v32 = vld [vmem:[%s5060_s3 + $0x4b4] sm:$0xf0]  ;;  %v3364_v63 = vld [vmem:[%s5060_s3 + $0x5ec] sm:$0xf]  ;;  %v3007_v1 = vld [vmem:[%s5060_s3 + $0x604] sm:$0xf0] }
  0x39   :  { %1725 = vmatpush.bf16.msrb.mxu1 %v2530_v37  ;;  %v3259_v37 = vld [vmem:[%s5060_s3 + $0x2a4] sm:$0xf]  ;;  %v2842_v39 = vor.u32 %v3322_v31, %v2839_v32  ;;  %v2279_v4 = vld [vmem:[%s5060_s3 + $0x54] sm:$0xf0]  ;;  %v3238_v6 = vld [vmem:[%s5060_s3 + $0x1fc] sm:$0xf] }
  0x3a   :  { %1738 = vmatpush.bf16.msrb.mxu2 %v2754_v43  ;;  %v3315_v43 = vld [vmem:[%s5060_s3 + $0x464] sm:$0xf]  ;;  %v3301_v9 = vld [vmem:[%s5060_s3 + $0x3f4] sm:$0xf]  ;;  %v2755_v10 = vld [vmem:[%s5060_s3 + $0x40c] sm:$0xf0] }
  0x3b   :  { %1751 = vmatpush.bf16.msrb.mxu3 %v2978_v46  ;;  %v2335_v46 = vld [vmem:[%s5060_s3 + $0xc4] sm:$0xf0]  ;;  %v2814_v51 = vor.u32 %v3315_v43, %v2811_v44  ;;  %v3357_v11 = vld [vmem:[%s5060_s3 + $0x5b4] sm:$0xf]  ;;  %v2758_v12 = vor.u32 %v3301_v9, %v2755_v10  ;;  %v2475_v19 = vld [vmem:[%s5060_s3 + $0x1dc] sm:$0xf0] }
  0x3c   :  { %1713 = vmatpush.bf16.msrb.mxu0 %v2278_v45  ;;  %v2590_v45 = vor.u32 %v3259_v37, %v2587_v38  ;;  %v2338_v52 = vor.u32 %v3196_v42, %v2335_v46  ;;  %v2727_v22 = vld [vmem:[%s5060_s3 + $0x3d4] sm:$0xf0]  ;;  %v3350_v24 = vld [vmem:[%s5060_s3 + $0x57c] sm:$0xf]  ;;  %v3343_v30 = vld [vmem:[%s5060_s3 + $0x544] sm:$0xf] }
  0x3d   :  { %1726 = vmatpush.bf16.msrb.mxu1 %v2502_v50  ;;  %v2559_v50 = vld [vmem:[%s5060_s3 + $0x284] sm:$0xf0]  ;;  %v2951_v25 = vld [vmem:[%s5060_s3 + $0x594] sm:$0xf0]  ;;  %v2923_v31 = vld [vmem:[%s5060_s3 + $0x55c] sm:$0xf0] }
  0x3e   :  { %1739 = vmatpush.bf16.msrb.mxu2 %v2726_v59  ;;  %v2562_v54 = vor.u32 %v3252_v49, %v2559_v50  ;;  %v2310_v59 = vor.u32 %v3189_v55, %v2307_v56  ;;  %v2954_v26 = vor.u32 %v3350_v24, %v2951_v25  ;;  %v2926_v32 = vor.u32 %v3343_v30, %v2923_v31  ;;  %v2677_v42 = vld [vmem:[%s5060_s3 + $0x350] sm:$0xf]  ;;  %v3284_v43 = vld [vmem:[%s5060_s3 + $0x368] sm:$0xf0]  ;;  %v3277_v55 = vld [vmem:[%s5060_s3 + $0x330] sm:$0xf0] }
  0x3f   :  { %1752 = vmatpush.bf16.msrb.mxu3 %v2950_v61  ;;  %v3308_v61 = vld [vmem:[%s5060_s3 + $0x42c] sm:$0xf]  ;;  %v2678_v50 = vor.u32 %v3284_v43, %v2677_v42  ;;  %v3326_v30 = vld [vmem:[%s5060_s3 + $0x4b8] sm:$0xf0] }
  0x40   :  { %1714 = vmatpush.bf16.msrb.mxu0 %v2250_v60  ;;  %v2534_v60 = vor.u32 %v3245_v57, %v2531_v58  ;;  %v2786_v0 = vor.u32 %v3308_v61, %v2783_v62  ;;  %v2901_v61 = vld [vmem:[%s5060_s3 + $0x510] sm:$0xf]  ;;  %v3340_v62 = vld [vmem:[%s5060_s3 + $0x528] sm:$0xf0] }
  0x41   :  { %1727 = vmatpush.bf16.msrb.mxu1 %v2474_v2  ;;  %v3010_v2 = vor.u32 %v3364_v63, %v3007_v1  ;;  %v3125_v63 = vld [vmem:[%s5060_s3 + $0x6d0] sm:$0xf]  ;;  %v2902_v10 = vor.u32 %v3340_v62, %v2901_v61  ;;  %v3186_v61 = vld [vmem:[%s5060_s3 + $0x58] sm:$0xf0]  ;;  %v2509_v62 = vld [vmem:[%s5060_s3 + $0x200] sm:$0xf] }
  0x42   :  { %1740 = vmatpush.bf16.msrb.mxu2 %v2698_v13  ;;  %v2979_v13 = vld [vmem:[%s5060_s3 + $0x5cc] sm:$0xf0] }
  0x43   :  { %1753 = vmatpush.bf16.msrb.mxu3 %v2922_v14  ;;  %v2982_v14 = vor.u32 %v3357_v11, %v2979_v13 }
  0x44   :  { %1759 = vmatpush.bf16.msra.mxu0 %v2450_v3  ;;  %v3182_v3 = vld [vmem:[%s5060_s3 + $0x3c] sm:$0xf] }
  0x45   :  { %1772 = vmatpush.bf16.msra.mxu1 %v2674_v7  ;;  %v2282_v5 = vor.u32 %v3182_v3, %v2279_v4  ;;  %v2503_v7 = vld [vmem:[%s5060_s3 + $0x214] sm:$0xf0]  ;;  %v3396_v3 = vld [vmem:[%s5060_s3 + $0x6e8] sm:$0xf0]  ;;  %v2397_v4 = vld [vmem:[%s5060_s3 + $0x120] sm:$0xf] }
  0x46   :  { %1785 = vmatpush.bf16.msra.mxu2 %v2898_v15  ;;  %v2506_v8 = vor.u32 %v3238_v6, %v2503_v7  ;;  %v3175_v15 = vld [vmem:[%s5060_s3 + $0x4] sm:$0xf]  ;;  %v2621_v7 = vld [vmem:[%s5060_s3 + $0x2e0] sm:$0xf] }
  0x47   :  { %1798 = vmatpush.bf16.msra.mxu3 %v3122_v17  ;;  %v3231_v17 = vld [vmem:[%s5060_s3 + $0x1c4] sm:$0xf] }
  0x48   :  { %1760 = vmatpush.bf16.msra.mxu0 %v2422_v16  ;;  %v2251_v16 = vld [vmem:[%s5060_s3 + $0x1c] sm:$0xf0]  ;;  %v2478_v20 = vor.u32 %v3231_v17, %v2475_v19  ;;  %v3389_v19 = vld [vmem:[%s5060_s3 + $0x6b0] sm:$0xf0] }
  0x49   :  { %1773 = vmatpush.bf16.msra.mxu1 %v2646_v21  ;;  %v2254_v18 = vor.u32 %v3175_v15, %v2251_v16  ;;  %v3294_v21 = vld [vmem:[%s5060_s3 + $0x3bc] sm:$0xf]  ;;  %v3333_v15 = vld [vmem:[%s5060_s3 + $0x4f0] sm:$0xf0]  ;;  %v3097_v16 = vld [vmem:[%s5060_s3 + $0x698] sm:$0xf] }
  0x4a   :  { %1786 = vmatpush.bf16.msra.mxu2 %v2870_v27  ;;  %v2730_v23 = vor.u32 %v3294_v21, %v2727_v22  ;;  %v3287_v27 = vld [vmem:[%s5060_s3 + $0x384] sm:$0xf]  ;;  %v2593_v22 = vld [vmem:[%s5060_s3 + $0x2a8] sm:$0xf] }
  0x4b   :  { %1799 = vmatpush.bf16.msra.mxu3 %v3094_v29  ;;  %v3207_v21 = vld [vmem:[%s5060_s3 + $0x100] sm:$0xf0] }
  0x4c   :  { %1761 = vmatpush.bf16.msra.mxu0 %v2394_v28  ;;  %v2699_v28 = vld [vmem:[%s5060_s3 + $0x39c] sm:$0xf0] }
  0x4d   :  { %1774 = vmatpush.bf16.msra.mxu1 %v2618_v33  ;;  %v2702_v29 = vor.u32 %v3287_v27, %v2699_v28  ;;  %v53_v33 = vld [vmem:[%s5062_s2] sm:$0xf]  ;;  %v3098_v27 = vor.u32 %v3389_v19, %v3097_v16  ;;  %v3281_v16 = vld [vmem:[%s5060_s3 + $0x354] sm:$0xf] }
  0x4e   :  { %1787 = vmatpush.bf16.msra.mxu2 %v2842_v39  ;;  %v55_v34 = vperm.slane %v53_v33, 0  ;;  %v56_v35 = vperm.slane %v53_v33, 1  ;;  %v2453_v39 = vld [vmem:[%s5060_s3 + $0x190] sm:$0xf]  ;;  %v57_v46 = vperm.slane %v53_v33, 2  ;;  %v58_v49 = vperm.slane %v53_v33, 3 }
  0x4f   :  { %1800 = vmatpush.bf16.msra.mxu3 %v3066_v41  ;;  %v3382_v33 = vld [vmem:[%s5060_s3 + $0x678] sm:$0xf0] }
  0x50   :  { %1762 = vmatpush.bf16.msra.mxu0 %v2366_v40  ;;  %v3228_v40 = vld [vmem:[%s5060_s3 + $0x1a8] sm:$0xf0] }
  0x51   :  { %1775 = vmatpush.bf16.msra.mxu1 %v2590_v45  ;;  %v2454_v47 = vor.u32 %v3228_v40, %v2453_v39  ;;  %v2817_v40 = vld [vmem:[%s5060_s3 + $0x468] sm:$0xf] }
  0x52   :  { %1788 = vmatpush.bf16.msra.mxu2 %v2814_v51  ;;  %v2425_v51 = vld [vmem:[%s5060_s3 + $0x158] sm:$0xf] }
  0x53   :  { %1801 = vmatpush.bf16.msra.mxu3 %v3038_v53 }
  0x54   :  { %1763 = vmatpush.bf16.msra.mxu0 %v2338_v52  ;;  %v3221_v52 = vld [vmem:[%s5060_s3 + $0x170] sm:$0xf0] }
  0x55   :  { %1776 = vmatpush.bf16.msra.mxu1 %v2562_v54  ;;  %v2649_v54 = vld [vmem:[%s5060_s3 + $0x318] sm:$0xf] }
  0x56   :  { %1789 = vmatpush.bf16.msra.mxu2 %v2786_v0 }
  0x57   :  { %1802 = vmatpush.bf16.msra.mxu3 %v3010_v2  ;;  %v2650_v2 = vor.u32 %v3277_v55, %v2649_v54  ;;  %v2789_v54 = vld [vmem:[%s5060_s3 + $0x430] sm:$0xf]  ;;  %v3312_v55 = vld [vmem:[%s5060_s3 + $0x448] sm:$0xf0] }
  0x58   :  { %1764 = vmatpush.bf16.msra.mxu0 %v2310_v59 }
  0x59   :  { %1777 = vmatpush.bf16.msra.mxu1 %v2534_v60  ;;  %v2426_v60 = vor.u32 %v3221_v52, %v2425_v51 }
  0x5a   :  { %1790 = vmatpush.bf16.msra.mxu2 %v2758_v12  ;;  %v3126_v12 = vor.u32 %v3396_v3, %v3125_v63  ;;  %v3242_v63 = vld [vmem:[%s5060_s3 + $0x218] sm:$0xf0]  ;;  %v3305_v3 = vld [vmem:[%s5060_s3 + $0x410] sm:$0xf0] }
  0x5b   :  { %1803 = vmatpush.bf16.msra.mxu3 %v2982_v14  ;;  %v2873_v14 = vld [vmem:[%s5060_s3 + $0x4d8] sm:$0xf] }
  0x5c   :  { %1765 = vmatpush.bf16.msra.mxu0 %v2282_v5  ;;  %v3214_v5 = vld [vmem:[%s5060_s3 + $0x138] sm:$0xf0]  ;;  %v2874_v25 = vor.u32 %v3333_v15, %v2873_v14  ;;  %v2455_v15 = vld [vmem:[%s5060_s3 + $0x1ac] sm:$0xf0] }
  0x5d   :  { %1778 = vmatpush.bf16.msra.mxu1 %v2506_v8  ;;  %v3270_v8 = vld [vmem:[%s5060_s3 + $0x2f8] sm:$0xf0]  ;;  %v2398_v13 = vor.u32 %v3214_v5, %v2397_v4  ;;  %v2985_v4 = vld [vmem:[%s5060_s3 + $0x5b8] sm:$0xf] }
  0x5e   :  { %1791 = vmatpush.bf16.msra.mxu2 %v2730_v23  ;;  %v3263_v23 = vld [vmem:[%s5060_s3 + $0x2c0] sm:$0xf0] }
  0x5f   :  { %1804 = vmatpush.bf16.msra.mxu3 %v2954_v26  ;;  %v2594_v31 = vor.u32 %v3263_v23, %v2593_v22 }
  0x60   :  { %1766 = vmatpush.bf16.msra.mxu0 %v2254_v18  ;;  %v2622_v18 = vor.u32 %v3270_v8, %v2621_v7  ;;  %v3361_v7 = vld [vmem:[%s5060_s3 + $0x5d0] sm:$0xf0]  ;;  %v2257_v8 = vld [vmem:[%s5060_s3 + $0x8] sm:$0xf] }
  0x61   :  { %1779 = vmatpush.bf16.msra.mxu1 %v2478_v20  ;;  %v2369_v20 = vld [vmem:[%s5060_s3 + $0xe8] sm:$0xf]  ;;  %v2986_v19 = vor.u32 %v3361_v7, %v2985_v4  ;;  %v3071_v7 = vld [vmem:[%s5060_s3 + $0x67c] sm:$0xf0] }
  0x62   :  { %1792 = vmatpush.bf16.msra.mxu2 %v2702_v29  ;;  %v2370_v28 = vor.u32 %v3207_v21, %v2369_v20  ;;  %v2845_v29 = vld [vmem:[%s5060_s3 + $0x4a0] sm:$0xf]  ;;  %v3298_v21 = vld [vmem:[%s5060_s3 + $0x3d8] sm:$0xf0] }
  0x63   :  { %1805 = vmatpush.bf16.msra.mxu3 %v2926_v32  ;;  %v3069_v32 = vld [vmem:[%s5060_s3 + $0x660] sm:$0xf] }
  0x64   :  { %v3070_v39 = vor.u32 %v3382_v33, %v3069_v32  ;;  %v2733_v20 = vld [vmem:[%s5060_s3 + $0x3c0] sm:$0xf]  ;;  %v2651_v32 = vld [vmem:[%s5060_s3 + $0x334] sm:$0xf0] }
  0xa0   :  { %v232_v36 = vpop.f32.mrf.mxu0 }
  0xa1   :  { %v233_v37 = vadd.f32 %v232_v36, %v55_v34  ;;  %v245_v38 = vpop.f32.mrf.mxu1  ;;  %v2341_v34 = vld [vmem:[%s5060_s3 + $0xb0] sm:$0xf] }
  0xa2   :  { %v246_v41 = vadd.f32 %v245_v38, %v56_v35  ;;  %v3200_v35 = vld [vmem:[%s5060_s3 + $0xc8] sm:$0xf0]  ;;  %v2565_v36 = vld [vmem:[%s5060_s3 + $0x270] sm:$0xf]  ;;  %v2846_v38 = vor.u32 %v3326_v30, %v2845_v29  ;;  %v2734_v29 = vor.u32 %v3298_v21, %v2733_v20  ;;  %v2427_v30 = vld [vmem:[%s5060_s3 + $0x174] sm:$0xf0] }
  0xa3   :  { %v275_v44 = vmax.f32 %v233_v37, 0.0  ;;  %v3256_v37 = vld [vmem:[%s5060_s3 + $0x288] sm:$0xf0]  ;;  %v2342_v42 = vor.u32 %v3200_v35, %v2341_v34  ;;  %v2705_v34 = vld [vmem:[%s5060_s3 + $0x388] sm:$0xf] }
  0xa4   :  { %v276_v45 = vmax.f32 %v246_v41, 0.0  ;;  %v3319_v41 = vld [vmem:[%s5060_s3 + $0x480] sm:$0xf0]  ;;  %v2566_v43 = vor.u32 %v3256_v37, %v2565_v36  ;;  %v2929_v36 = vld [vmem:[%s5060_s3 + $0x548] sm:$0xf] }
  0xa5   :  { %v4051_v48 = vpack.c.bf16 %v275_v44, %v275_v44  ;;  %v3041_v44 = vld [vmem:[%s5060_s3 + $0x628] sm:$0xf]  ;;  %v2818_v51 = vor.u32 %v3319_v41, %v2817_v40  ;;  %v3291_v35 = vld [vmem:[%s5060_s3 + $0x3a0] sm:$0xf0]  ;;  %v3372_v20 = vld [vmem:[%s5060_s3 + $0x62c] sm:$0xf] }
  0xa6   :  { %v4059_v53 = vpack.c.bf16 %v276_v45, %v276_v45  ;;  %v3375_v45 = vld [vmem:[%s5060_s3 + $0x640] sm:$0xf0]  ;;  %v3043_v21 = vld [vmem:[%s5060_s3 + $0x644] sm:$0xf0] }
  0xa7   :  { %1715 = vmatmul.bf16.vlgmr.msrb.gmra.mxu0 %v4051_v48  ;;  %v3042_v52 = vor.u32 %v3375_v45, %v3041_v44  ;;  %v3347_v37 = vld [vmem:[%s5060_s3 + $0x560] sm:$0xf0]  ;;  %v2706_v45 = vor.u32 %v3291_v35, %v2705_v34  ;;  %v2287_v35 = vld [vmem:[%s5060_s3 + $0x5c] sm:$0xf0] }
  0xa8   :  { %v258_v56 = vpop.f32.mrf.mxu2  ;;  %1728 = vmatmul.bf16.vlgmr.msrb.gmra.mxu1 %v4059_v53  ;;  %1811 = vmatpush.bf16.msrb.mxu0 %v2454_v47  ;;  %v234_v59 = vpop.f32.mrf.mxu0  ;;  %v3193_v47 = vld [vmem:[%s5060_s3 + $0x90] sm:$0xf0]  ;;  %v3211_v44 = vld [vmem:[%s5060_s3 + $0x124] sm:$0xf] }
  0xa9   :  { %v259_v57 = vadd.f32 %v258_v56, %v57_v46  ;;  %v271_v58 = vpop.f32.mrf.mxu3  ;;  %1824 = vmatpush.bf16.msrb.mxu1 %v2678_v50  ;;  %v247_v1 = vpop.f32.mrf.mxu1  ;;  %v2313_v46 = vld [vmem:[%s5060_s3 + $0x78] sm:$0xf]  ;;  %v3249_v50 = vld [vmem:[%s5060_s3 + $0x250] sm:$0xf0]  ;;  %v3368_v59 = vld [vmem:[%s5060_s3 + $0x608] sm:$0xf0] }
  0xaa   :  { %v272_v0 = vadd.f32 %v271_v58, %v58_v49  ;;  %v2537_v49 = vld [vmem:[%s5060_s3 + $0x238] sm:$0xf]  ;;  %v2314_v56 = vor.u32 %v3193_v47, %v2313_v46  ;;  %v3013_v58 = vld [vmem:[%s5060_s3 + $0x5f0] sm:$0xf]  ;;  %v2399_v46 = vld [vmem:[%s5060_s3 + $0x13c] sm:$0xf0] }
  0xab   :  { %v277_v6 = vmax.f32 %v259_v57, 0.0  ;;  %v2538_v57 = vor.u32 %v3249_v50, %v2537_v49  ;;  %v3014_v1 = vor.u32 %v3368_v59, %v3013_v58  ;;  %v3267_v47 = vld [vmem:[%s5060_s3 + $0x2e4] sm:$0xf]  ;;  %v2623_v49 = vld [vmem:[%s5060_s3 + $0x2fc] sm:$0xf0]  ;;  %v2930_v50 = vor.u32 %v3347_v37, %v2929_v36 }
  0xac   :  { %v278_v9 = vmax.f32 %v272_v0, 0.0  ;;  %1812 = vmatpush.bf16.msrb.mxu0 %v2426_v60  ;;  %v2285_v60 = vld [vmem:[%s5060_s3 + $0x40] sm:$0xf]  ;;  %v2790_v0 = vor.u32 %v3312_v55, %v2789_v54  ;;  %v3330_v54 = vld [vmem:[%s5060_s3 + $0x4dc] sm:$0xf] }
  0xad   :  { %v4093_v11 = vpack.c.bf16 %v277_v6, %v277_v6  ;;  %1825 = vmatpush.bf16.msrb.mxu1 %v2650_v2  ;;  %v2761_v2 = vld [vmem:[%s5060_s3 + $0x3f8] sm:$0xf]  ;;  %v2286_v5 = vor.u32 %v3186_v61, %v2285_v60  ;;  %v2510_v6 = vor.u32 %v3242_v63, %v2509_v62  ;;  %v3386_v58 = vld [vmem:[%s5060_s3 + $0x69c] sm:$0xf]  ;;  %v3204_v60 = vld [vmem:[%s5060_s3 + $0xec] sm:$0xf] }
  0xae   :  { %v4104_v17 = vpack.c.bf16 %v278_v9, %v278_v9  ;;  %v3179_v9 = vld [vmem:[%s5060_s3 + $0x20] sm:$0xf0]  ;;  %v2762_v14 = vor.u32 %v3305_v3, %v2761_v2  ;;  %v2875_v55 = vld [vmem:[%s5060_s3 + $0x4f4] sm:$0xf0]  ;;  %v2371_v61 = vld [vmem:[%s5060_s3 + $0x104] sm:$0xf0] }
  0xaf   :  { %1741 = vmatmul.bf16.vlgmr.msrb.gmra.mxu2 %v4093_v11  ;;  %v2258_v22 = vor.u32 %v3179_v9, %v2257_v8  ;;  %v3099_v59 = vld [vmem:[%s5060_s3 + $0x6b4] sm:$0xf0]  ;;  %v3260_v62 = vld [vmem:[%s5060_s3 + $0x2ac] sm:$0xf]  ;;  %v2595_v63 = vld [vmem:[%s5060_s3 + $0x2c4] sm:$0xf0]  ;;  %v2374_v4 = vor.u32 %v3204_v60, %v2371_v61 }
  0xb0   :  { %1754 = vmatmul.bf16.vlgmr.msrb.gmra.mxu3 %v4104_v17  ;;  %1837 = vmatpush.bf16.msrb.mxu2 %v2902_v10  ;;  %v260_v24 = vpop.f32.mrf.mxu2  ;;  %v2481_v10 = vld [vmem:[%s5060_s3 + $0x1c8] sm:$0xf]  ;;  %v3323_v2 = vld [vmem:[%s5060_s3 + $0x4a4] sm:$0xf]  ;;  %v2847_v3 = vld [vmem:[%s5060_s3 + $0x4bc] sm:$0xf0] }
  0xb1   :  { %1850 = vmatpush.bf16.msrb.mxu3 %v3126_v12  ;;  %v273_v26 = vpop.f32.mrf.mxu3  ;;  %1813 = vmatpush.bf16.msrb.mxu0 %v2398_v13  ;;  %v3235_v12 = vld [vmem:[%s5060_s3 + $0x1e0] sm:$0xf0]  ;;  %v3225_v13 = vld [vmem:[%s5060_s3 + $0x194] sm:$0xf]  ;;  %v2957_v24 = vld [vmem:[%s5060_s3 + $0x580] sm:$0xf] }
  0xb2   :  { %1826 = vmatpush.bf16.msrb.mxu1 %v2622_v18  ;;  %v2679_v18 = vld [vmem:[%s5060_s3 + $0x36c] sm:$0xf0]  ;;  %v2482_v23 = vor.u32 %v3235_v12, %v2481_v10  ;;  %v2458_v26 = vor.u32 %v3225_v13, %v2455_v15  ;;  %v3197_v8 = vld [vmem:[%s5060_s3 + $0xb4] sm:$0xf]  ;;  %v2850_v13 = vor.u32 %v3323_v2, %v2847_v3  ;;  %v3316_v15 = vld [vmem:[%s5060_s3 + $0x46c] sm:$0xf] }
  0xb3   :  { %v2343_v9 = vld [vmem:[%s5060_s3 + $0xcc] sm:$0xf0]  ;;  %v3253_v10 = vld [vmem:[%s5060_s3 + $0x274] sm:$0xf]  ;;  %v3183_v34 = vld [vmem:[%s5060_s3 + $0x44] sm:$0xf] }
  0xb4   :  { %1838 = vmatpush.bf16.msrb.mxu2 %v2874_v25  ;;  %v3354_v25 = vld [vmem:[%s5060_s3 + $0x598] sm:$0xf0]  ;;  %v2567_v12 = vld [vmem:[%s5060_s3 + $0x28c] sm:$0xf0]  ;;  %v3239_v36 = vld [vmem:[%s5060_s3 + $0x204] sm:$0xf] }
  0xb5   :  { %1851 = vmatpush.bf16.msrb.mxu3 %v3098_v27  ;;  %1814 = vmatpush.bf16.msrb.mxu0 %v2370_v28  ;;  %v2682_v27 = vor.u32 %v3281_v16, %v2679_v18  ;;  %v3218_v28 = vld [vmem:[%s5060_s3 + $0x15c] sm:$0xf]  ;;  %v2958_v33 = vor.u32 %v3354_v25, %v2957_v24  ;;  %v2819_v16 = vld [vmem:[%s5060_s3 + $0x484] sm:$0xf0]  ;;  %v2346_v18 = vor.u32 %v3197_v8, %v2343_v9  ;;  %v2539_v25 = vld [vmem:[%s5060_s3 + $0x254] sm:$0xf0] }
  0xb6   :  { %1827 = vmatpush.bf16.msrb.mxu1 %v2594_v31  ;;  %v3274_v31 = vld [vmem:[%s5060_s3 + $0x31c] sm:$0xf]  ;;  %v2430_v40 = vor.u32 %v3218_v28, %v2427_v30  ;;  %v3309_v28 = vld [vmem:[%s5060_s3 + $0x434] sm:$0xf]  ;;  %v2511_v37 = vld [vmem:[%s5060_s3 + $0x21c] sm:$0xf0] }
  0xb7   :  { %1767 = vmatmul.bf16.vlgmr.msra.gmra.mxu0 %v4051_v48  ;;  %v2654_v41 = vor.u32 %v3274_v31, %v2651_v32  ;;  %v3246_v24 = vld [vmem:[%s5060_s3 + $0x23c] sm:$0xf]  ;;  %v3365_v32 = vld [vmem:[%s5060_s3 + $0x5f4] sm:$0xf]  ;;  %v2433_v2 = vld [vmem:[%s5060_s3 + $0x160] sm:$0xf] }
  0xb8   :  { %1839 = vmatpush.bf16.msrb.mxu2 %v2846_v38  ;;  %1780 = vmatmul.bf16.vlgmr.msra.gmra.mxu1 %v4059_v53  ;;  %v3337_v38 = vld [vmem:[%s5060_s3 + $0x514] sm:$0xf]  ;;  %v2542_v31 = vor.u32 %v3246_v24, %v2539_v25  ;;  %v3288_v8 = vld [vmem:[%s5060_s3 + $0x38c] sm:$0xf]  ;;  %v2707_v9 = vld [vmem:[%s5060_s3 + $0x3a4] sm:$0xf0] }
  0xb9   :  { %1852 = vmatpush.bf16.msrb.mxu3 %v3070_v39  ;;  %1815 = vmatpush.bf16.msrb.mxu0 %v2342_v42  ;;  %v2903_v39 = vld [vmem:[%s5060_s3 + $0x52c] sm:$0xf0]  ;;  %v3393_v42 = vld [vmem:[%s5060_s3 + $0x6d4] sm:$0xf]  ;;  %v2629_v25 = vld [vmem:[%s5060_s3 + $0x2e8] sm:$0xf] }
  0xba   :  { %1828 = vmatpush.bf16.msrb.mxu1 %v2566_v43  ;;  %v3127_v43 = vld [vmem:[%s5060_s3 + $0x6ec] sm:$0xf0] }
  0xbc   :  { %1840 = vmatpush.bf16.msrb.mxu2 %v2818_v51  ;;  %v2906_v51 = vor.u32 %v3337_v38, %v2903_v39 }
  0xbd   :  { %1853 = vmatpush.bf16.msrb.mxu3 %v3042_v52  ;;  %1816 = vmatpush.bf16.msrb.mxu0 %v2314_v56  ;;  %v3130_v52 = vor.u32 %v3393_v42, %v3127_v43  ;;  %v2402_v56 = vor.u32 %v3211_v44, %v2399_v46  ;;  %v3358_v42 = vld [vmem:[%s5060_s3 + $0x5bc] sm:$0xf]  ;;  %v2290_v43 = vor.u32 %v3183_v34, %v2287_v35  ;;  %v3176_v46 = vld [vmem:[%s5060_s3 + $0xc] sm:$0xf]  ;;  %v2377_v34 = vld [vmem:[%s5060_s3 + $0xf0] sm:$0xf] }
  0xbe   :  { %1829 = vmatpush.bf16.msrb.mxu1 %v2538_v57  ;;  %v2626_v57 = vor.u32 %v3267_v47, %v2623_v49  ;;  %v2514_v44 = vor.u32 %v3239_v36, %v2511_v37  ;;  %v2259_v47 = vld [vmem:[%s5060_s3 + $0x24] sm:$0xf0]  ;;  %v3232_v49 = vld [vmem:[%s5060_s3 + $0x1cc] sm:$0xf]  ;;  %v2601_v37 = vld [vmem:[%s5060_s3 + $0x2b0] sm:$0xf] }
  0xbf   :  { %1793 = vmatmul.bf16.vlgmr.msra.gmra.mxu2 %v4093_v11  ;;  %v2262_v60 = vor.u32 %v3176_v46, %v2259_v47  ;;  %v3208_v35 = vld [vmem:[%s5060_s3 + $0x108] sm:$0xf0]  ;;  %v2349_v46 = vld [vmem:[%s5060_s3 + $0xb8] sm:$0xf]  ;;  %v3201_v47 = vld [vmem:[%s5060_s3 + $0xd0] sm:$0xf0] }
  0xc0   :  { %1806 = vmatmul.bf16.vlgmr.msra.gmra.mxu3 %v4104_v17  ;;  %1841 = vmatpush.bf16.msrb.mxu2 %v2790_v0  ;;  %v2878_v0 = vor.u32 %v3330_v54, %v2875_v55  ;;  %v3229_v54 = vld [vmem:[%s5060_s3 + $0x1b0] sm:$0xf0]  ;;  %v2685_v55 = vld [vmem:[%s5060_s3 + $0x358] sm:$0xf] }
  0xc1   :  { %1854 = vmatpush.bf16.msrb.mxu3 %v3014_v1  ;;  %1817 = vmatpush.bf16.msrb.mxu0 %v2286_v5  ;;  %v3102_v1 = vor.u32 %v3386_v58, %v3099_v59  ;;  %v2598_v5 = vor.u32 %v3260_v62, %v2595_v63  ;;  %v3295_v58 = vld [vmem:[%s5060_s3 + $0x3c4] sm:$0xf]  ;;  %v2735_v59 = vld [vmem:[%s5060_s3 + $0x3dc] sm:$0xf0] }
  0xc2   :  { %1830 = vmatpush.bf16.msrb.mxu1 %v2510_v6  ;;  %v3379_v6 = vld [vmem:[%s5060_s3 + $0x664] sm:$0xf]  ;;  %v2959_v63 = vld [vmem:[%s5060_s3 + $0x59c] sm:$0xf0]  ;;  %v2738_v3 = vor.u32 %v3295_v58, %v2735_v59  ;;  %v3376_v58 = vld [vmem:[%s5060_s3 + $0x648] sm:$0xf0] }
  0xc3   :  { %v3351_v62 = vld [vmem:[%s5060_s3 + $0x584] sm:$0xf] }
  0xc4   :  { %1842 = vmatpush.bf16.msrb.mxu2 %v2762_v14  ;;  %v3074_v14 = vor.u32 %v3379_v6, %v3071_v7  ;;  %v3278_v6 = vld [vmem:[%s5060_s3 + $0x338] sm:$0xf0]  ;;  %v2962_v7 = vor.u32 %v3351_v62, %v2959_v63  ;;  %v2545_v63 = vld [vmem:[%s5060_s3 + $0x240] sm:$0xf] }
  0xc5   :  { %1855 = vmatpush.bf16.msrb.mxu3 %v2986_v19  ;;  %1818 = vmatpush.bf16.msrb.mxu0 %v2258_v22  ;;  %v2570_v19 = vor.u32 %v3253_v10, %v2567_v12  ;;  %v3190_v22 = vld [vmem:[%s5060_s3 + $0x7c] sm:$0xf]  ;;  %v3344_v10 = vld [vmem:[%s5060_s3 + $0x54c] sm:$0xf]  ;;  %v2931_v12 = vld [vmem:[%s5060_s3 + $0x564] sm:$0xf0] }
  0xc6   :  { %1831 = vmatpush.bf16.msrb.mxu1 %v2482_v23  ;;  %v2315_v23 = vld [vmem:[%s5060_s3 + $0x94] sm:$0xf0] }
  0xc7   :  { %v2318_v30 = vor.u32 %v3190_v22, %v2315_v23  ;;  %v3215_v22 = vld [vmem:[%s5060_s3 + $0x140] sm:$0xf0]  ;;  %v2934_v23 = vor.u32 %v3344_v10, %v2931_v12  ;;  %v2517_v12 = vld [vmem:[%s5060_s3 + $0x208] sm:$0xf] }
  0xc8   :  { %1843 = vmatpush.bf16.msrb.mxu2 %v2734_v29  ;;  %1819 = vmatmul.bf16.vlgmr.msrb.gmra.mxu0 %v4051_v48  ;;  %v2791_v29 = vld [vmem:[%s5060_s3 + $0x44c] sm:$0xf0] }
  0xc9   :  { %1863 = vmatpush.bf16.msra.mxu0 %v2458_v26  ;;  %1856 = vmatpush.bf16.msrb.mxu3 %v2958_v33  ;;  %v2822_v26 = vor.u32 %v3316_v15, %v2819_v16  ;;  %v3015_v33 = vld [vmem:[%s5060_s3 + $0x60c] sm:$0xf0]  ;;  %v2794_v38 = vor.u32 %v3309_v28, %v2791_v29  ;;  %v2881_v28 = vld [vmem:[%s5060_s3 + $0x4e0] sm:$0xf]  ;;  %v3334_v29 = vld [vmem:[%s5060_s3 + $0x4f8] sm:$0xf0] }
  0xca   :  { %1876 = vmatpush.bf16.msra.mxu1 %v2682_v27  ;;  %v3046_v27 = vor.u32 %v3372_v20, %v3043_v21  ;;  %v3018_v39 = vor.u32 %v3365_v32, %v3015_v33  ;;  %v2710_v20 = vor.u32 %v3288_v8, %v2707_v9  ;;  %v2405_v21 = vld [vmem:[%s5060_s3 + $0x128] sm:$0xf]  ;;  %v3390_v32 = vld [vmem:[%s5060_s3 + $0x6b8] sm:$0xf0]  ;;  %v2882_v36 = vor.u32 %v3334_v29, %v2881_v28  ;;  %v3187_v9 = vld [vmem:[%s5060_s3 + $0x60] sm:$0xf0] }
  0xcb   :  { %1832 = vmatmul.bf16.vlgmr.msrb.gmra.mxu1 %v4059_v53  ;;  %v2293_v8 = vld [vmem:[%s5060_s3 + $0x48] sm:$0xf]  ;;  %v2463_v28 = vld [vmem:[%s5060_s3 + $0x1b4] sm:$0xf0]  ;;  %v3282_v29 = vld [vmem:[%s5060_s3 + $0x35c] sm:$0xf] }
  0xcc   :  { %1844 = vmatpush.bf16.msrb.mxu2 %v2706_v45  ;;  %v2987_v45 = vld [vmem:[%s5060_s3 + $0x5d4] sm:$0xf0] }
  0xcd   :  { %1864 = vmatpush.bf16.msra.mxu0 %v2430_v40  ;;  %1857 = vmatpush.bf16.msrb.mxu3 %v2930_v50  ;;  %v3302_v40 = vld [vmem:[%s5060_s3 + $0x3fc] sm:$0xf]  ;;  %v2483_v50 = vld [vmem:[%s5060_s3 + $0x1e4] sm:$0xf0] }
  0xce   :  { %1877 = vmatpush.bf16.msra.mxu1 %v2654_v41  ;;  %v2763_v41 = vld [vmem:[%s5060_s3 + $0x414] sm:$0xf0]  ;;  %v2486_v61 = vor.u32 %v3232_v49, %v2483_v50 }
  0xcf   :  { %1845 = vmatmul.bf16.vlgmr.msrb.gmra.mxu2 %v4093_v11  ;;  %v2573_v50 = vld [vmem:[%s5060_s3 + $0x278] sm:$0xf] }
  0xd0   :  { %1889 = vmatpush.bf16.msra.mxu2 %v2906_v51  ;;  %1858 = vmatmul.bf16.vlgmr.msrb.gmra.mxu3 %v4104_v17  ;;  %v2461_v51 = vld [vmem:[%s5060_s3 + $0x198] sm:$0xf] }
  0xd1   :  { %1902 = vmatpush.bf16.msra.mxu3 %v3130_v52  ;;  %1865 = vmatpush.bf16.msra.mxu0 %v2402_v56  ;;  %v2766_v52 = vor.u32 %v3302_v40, %v2763_v41  ;;  %v3285_v56 = vld [vmem:[%s5060_s3 + $0x370] sm:$0xf0]  ;;  %v2853_v40 = vld [vmem:[%s5060_s3 + $0x4a8] sm:$0xf]  ;;  %v3327_v41 = vld [vmem:[%s5060_s3 + $0x4c0] sm:$0xf0] }
  0xd2   :  { %1878 = vmatpush.bf16.msra.mxu1 %v2626_v57  ;;  %v2990_v57 = vor.u32 %v3358_v42, %v2987_v45  ;;  %v2378_v42 = vor.u32 %v3208_v35, %v2377_v34  ;;  %v2854_v49 = vor.u32 %v3327_v41, %v2853_v40  ;;  %v2965_v35 = vld [vmem:[%s5060_s3 + $0x588] sm:$0xf] }
  0xd4   :  { %1890 = vmatpush.bf16.msra.mxu2 %v2878_v0  ;;  %v2462_v0 = vor.u32 %v3229_v54, %v2461_v51  ;;  %v3257_v51 = vld [vmem:[%s5060_s3 + $0x290] sm:$0xf0]  ;;  %v2825_v54 = vld [vmem:[%s5060_s3 + $0x470] sm:$0xf] }
  0xd5   :  { %1903 = vmatpush.bf16.msra.mxu3 %v3102_v1  ;;  %1866 = vmatpush.bf16.msra.mxu0 %v2374_v4  ;;  %v2686_v1 = vor.u32 %v3285_v56, %v2685_v55  ;;  %v3222_v4 = vld [vmem:[%s5060_s3 + $0x178] sm:$0xf0]  ;;  %v3320_v55 = vld [vmem:[%s5060_s3 + $0x488] sm:$0xf0]  ;;  %v2350_v56 = vor.u32 %v3201_v47, %v2349_v46  ;;  %v2574_v59 = vor.u32 %v3257_v51, %v2573_v50  ;;  %v2713_v46 = vld [vmem:[%s5060_s3 + $0x390] sm:$0xf] }
  0xd6   :  { %1879 = vmatpush.bf16.msra.mxu1 %v2598_v5  ;;  %v2657_v5 = vld [vmem:[%s5060_s3 + $0x320] sm:$0xf]  ;;  %v2434_v15 = vor.u32 %v3222_v4, %v2433_v2  ;;  %v2826_v62 = vor.u32 %v3320_v55, %v2825_v54  ;;  %v2797_v2 = vld [vmem:[%s5060_s3 + $0x438] sm:$0xf]  ;;  %v3292_v47 = vld [vmem:[%s5060_s3 + $0x3a8] sm:$0xf0] }
  0xd7   :  { %v2658_v16 = vor.u32 %v3278_v6, %v2657_v5  ;;  %v3021_v5 = vld [vmem:[%s5060_s3 + $0x5f8] sm:$0xf]  ;;  %v3369_v6 = vld [vmem:[%s5060_s3 + $0x610] sm:$0xf0]  ;;  %v3348_v50 = vld [vmem:[%s5060_s3 + $0x568] sm:$0xf0] }
  0xd8   :  { %1891 = vmatpush.bf16.msra.mxu2 %v2850_v13  ;;  %v2909_v13 = vld [vmem:[%s5060_s3 + $0x518] sm:$0xf]  ;;  %v3338_v51 = vld [vmem:[%s5060_s3 + $0x51c] sm:$0xf] }
  0xd9   :  { %1904 = vmatpush.bf16.msra.mxu3 %v3074_v14  ;;  %1867 = vmatpush.bf16.msra.mxu0 %v2346_v18  ;;  %v3341_v14 = vld [vmem:[%s5060_s3 + $0x530] sm:$0xf0]  ;;  %v3133_v18 = vld [vmem:[%s5060_s3 + $0x6d8] sm:$0xf]  ;;  %v3394_v55 = vld [vmem:[%s5060_s3 + $0x6dc] sm:$0xf] }
  0xda   :  { %1880 = vmatpush.bf16.msra.mxu1 %v2570_v19  ;;  %v3397_v19 = vld [vmem:[%s5060_s3 + $0x6f0] sm:$0xf0]  ;;  %v2910_v24 = vor.u32 %v3341_v14, %v2909_v13  ;;  %v3243_v13 = vld [vmem:[%s5060_s3 + $0x220] sm:$0xf0]  ;;  %v3022_v14 = vor.u32 %v3369_v6, %v3021_v5  ;;  %v3107_v6 = vld [vmem:[%s5060_s3 + $0x6bc] sm:$0xf0] }
  0xdb   :  { %v3387_v5 = vld [vmem:[%s5060_s3 + $0x6a4] sm:$0xf] }
  0xdc   :  { %1892 = vmatpush.bf16.msra.mxu2 %v2822_v26  ;;  %v3271_v26 = vld [vmem:[%s5060_s3 + $0x300] sm:$0xf0] }
  0xdd   :  { %1905 = vmatpush.bf16.msra.mxu3 %v3046_v27  ;;  %1868 = vmatpush.bf16.msra.mxu0 %v2318_v30  ;;  %v3134_v27 = vor.u32 %v3397_v19, %v3133_v18  ;;  %v2406_v30 = vor.u32 %v3215_v22, %v2405_v21  ;;  %v2630_v33 = vor.u32 %v3271_v26, %v2629_v25  ;;  %v2993_v19 = vld [vmem:[%s5060_s3 + $0x5c0] sm:$0xf]  ;;  %v2265_v21 = vld [vmem:[%s5060_s3 + $0x10] sm:$0xf]  ;;  %v3236_v25 = vld [vmem:[%s5060_s3 + $0x1e8] sm:$0xf0] }
  0xde   :  { %1881 = vmatpush.bf16.msra.mxu1 %v2542_v31  ;;  %v3105_v31 = vld [vmem:[%s5060_s3 + $0x6a0] sm:$0xf]  ;;  %v2294_v18 = vor.u32 %v3187_v9, %v2293_v8  ;;  %v2518_v22 = vor.u32 %v3243_v13, %v2517_v12  ;;  %v3205_v8 = vld [vmem:[%s5060_s3 + $0xf4] sm:$0xf]  ;;  %v2379_v9 = vld [vmem:[%s5060_s3 + $0x10c] sm:$0xf0] }
  0xdf   :  { %v3261_v12 = vld [vmem:[%s5060_s3 + $0x2b4] sm:$0xf]  ;;  %v2603_v13 = vld [vmem:[%s5060_s3 + $0x2cc] sm:$0xf0] }
  0xe0   :  { %1893 = vmatpush.bf16.msra.mxu2 %v2794_v38  ;;  %v3264_v38 = vld [vmem:[%s5060_s3 + $0x2c8] sm:$0xf0] }
  0xe1   :  { %1906 = vmatpush.bf16.msra.mxu3 %v3018_v39  ;;  %1869 = vmatpush.bf16.msra.mxu0 %v2290_v43  ;;  %v3106_v39 = vor.u32 %v3390_v32, %v3105_v31  ;;  %v3077_v43 = vld [vmem:[%s5060_s3 + $0x668] sm:$0xf]  ;;  %v2602_v45 = vor.u32 %v3264_v38, %v2601_v37  ;;  %v2687_v31 = vld [vmem:[%s5060_s3 + $0x374] sm:$0xf0] }
  0xe2   :  { %1882 = vmatpush.bf16.msra.mxu1 %v2514_v44  ;;  %v3383_v44 = vld [vmem:[%s5060_s3 + $0x680] sm:$0xf0]  ;;  %v2741_v32 = vld [vmem:[%s5060_s3 + $0x3c8] sm:$0xf]  ;;  %v2690_v40 = vor.u32 %v3282_v29, %v2687_v31  ;;  %v2827_v29 = vld [vmem:[%s5060_s3 + $0x48c] sm:$0xf0] }
  0xe3   :  { %v3373_v31 = vld [vmem:[%s5060_s3 + $0x634] sm:$0xf] }
  0xe4   :  { %1894 = vmatpush.bf16.msra.mxu2 %v2766_v52  ;;  %v3078_v52 = vor.u32 %v3383_v44, %v3077_v43  ;;  %v3275_v43 = vld [vmem:[%s5060_s3 + $0x324] sm:$0xf]  ;;  %v2659_v44 = vld [vmem:[%s5060_s3 + $0x33c] sm:$0xf0] }
  0xe5   :  { %1907 = vmatpush.bf16.msra.mxu3 %v2990_v57  ;;  %1870 = vmatpush.bf16.msra.mxu0 %v2262_v60  ;;  %v3049_v57 = vld [vmem:[%s5060_s3 + $0x630] sm:$0xf]  ;;  %v2321_v60 = vld [vmem:[%s5060_s3 + $0x80] sm:$0xf] }
  0xe6   :  { %1883 = vmatpush.bf16.msra.mxu1 %v2486_v61  ;;  %v3194_v61 = vld [vmem:[%s5060_s3 + $0x98] sm:$0xf0] }
  0xe7   :  { %v2322_v4 = vor.u32 %v3194_v61, %v2321_v60  ;;  %v2407_v60 = vld [vmem:[%s5060_s3 + $0x144] sm:$0xf0] }
  0xe8   :  { %1895 = vmatpush.bf16.msra.mxu2 %v2738_v3  ;;  %1871 = vmatmul.bf16.vlgmr.msra.gmra.mxu0 %v4051_v48  ;;  %v3313_v3 = vld [vmem:[%s5060_s3 + $0x450] sm:$0xf0] }
  0xe9   :  { %1915 = vmatpush.bf16.msrb.mxu0 %v2462_v0  ;;  %1908 = vmatpush.bf16.msra.mxu3 %v2962_v7  ;;  %v3250_v0 = vld [vmem:[%s5060_s3 + $0x258] sm:$0xf0]  ;;  %v2798_v10 = vor.u32 %v3313_v3, %v2797_v2  ;;  %v3331_v2 = vld [vmem:[%s5060_s3 + $0x4e4] sm:$0xf]  ;;  %v2883_v3 = vld [vmem:[%s5060_s3 + $0x4fc] sm:$0xf0] }
  0xea   :  { %1928 = vmatpush.bf16.msrb.mxu1 %v2686_v1  ;;  %v3050_v1 = vor.u32 %v3376_v58, %v3049_v57  ;;  %v2546_v7 = vor.u32 %v3250_v0, %v2545_v63  ;;  %v2662_v57 = vor.u32 %v3275_v43, %v2659_v44  ;;  %v2714_v58 = vor.u32 %v3292_v47, %v2713_v46  ;;  %v3268_v63 = vld [vmem:[%s5060_s3 + $0x2ec] sm:$0xf]  ;;  %v2631_v0 = vld [vmem:[%s5060_s3 + $0x304] sm:$0xf0]  ;;  %v3366_v43 = vld [vmem:[%s5060_s3 + $0x5fc] sm:$0xf] }
  0xeb   :  { %1884 = vmatmul.bf16.vlgmr.msra.gmra.mxu1 %v4059_v53  ;;  %v3023_v44 = vld [vmem:[%s5060_s3 + $0x614] sm:$0xf0]  ;;  %v3184_v46 = vld [vmem:[%s5060_s3 + $0x4c] sm:$0xf]  ;;  %v2295_v47 = vld [vmem:[%s5060_s3 + $0x64] sm:$0xf0] }
  0xec   :  { %1896 = vmatpush.bf16.msra.mxu2 %v2710_v20  ;;  %v3362_v20 = vld [vmem:[%s5060_s3 + $0x5d8] sm:$0xf0] }
  0xed   :  { %1916 = vmatpush.bf16.msrb.mxu0 %v2434_v15  ;;  %1909 = vmatpush.bf16.msra.mxu3 %v2934_v23  ;;  %v2769_v15 = vld [vmem:[%s5060_s3 + $0x400] sm:$0xf]  ;;  %v3180_v23 = vld [vmem:[%s5060_s3 + $0x28] sm:$0xf0] }
  0xee   :  { %1929 = vmatpush.bf16.msrb.mxu1 %v2658_v16  ;;  %v3306_v16 = vld [vmem:[%s5060_s3 + $0x418] sm:$0xf0]  ;;  %v2266_v34 = vor.u32 %v3180_v23, %v2265_v21  ;;  %v2606_v21 = vor.u32 %v3261_v12, %v2603_v13  ;;  %v2351_v23 = vld [vmem:[%s5060_s3 + $0xd4] sm:$0xf0] }
  0xef   :  { %1897 = vmatmul.bf16.vlgmr.msra.gmra.mxu2 %v4093_v11  ;;  %v2770_v26 = vor.u32 %v3306_v16, %v2769_v15  ;;  %v3324_v15 = vld [vmem:[%s5060_s3 + $0x4ac] sm:$0xf]  ;;  %v2855_v16 = vld [vmem:[%s5060_s3 + $0x4c4] sm:$0xf0] }
  0xf0   :  { %1941 = vmatpush.bf16.msrb.mxu2 %v2910_v24  ;;  %1910 = vmatmul.bf16.vlgmr.msra.gmra.mxu3 %v4104_v17  ;;  %v2489_v24 = vld [vmem:[%s5060_s3 + $0x1d0] sm:$0xf] }
  0xf1   :  { %1954 = vmatpush.bf16.msrb.mxu3 %v3134_v27  ;;  %1917 = vmatpush.bf16.msrb.mxu0 %v2406_v30  ;;  %v3226_v27 = vld [vmem:[%s5060_s3 + $0x19c] sm:$0xf]  ;;  %v2994_v30 = vor.u32 %v3362_v20, %v2993_v19  ;;  %v2490_v37 = vor.u32 %v3236_v25, %v2489_v24  ;;  %v3380_v19 = vld [vmem:[%s5060_s3 + $0x66c] sm:$0xf]  ;;  %v3079_v20 = vld [vmem:[%s5060_s3 + $0x684] sm:$0xf0]  ;;  %v2858_v24 = vor.u32 %v3324_v15, %v2855_v16 }
  0xf2   :  { %1930 = vmatpush.bf16.msrb.mxu1 %v2630_v33  ;;  %v3299_v33 = vld [vmem:[%s5060_s3 + $0x3e0] sm:$0xf0]  ;;  %v2466_v38 = vor.u32 %v3226_v27, %v2463_v28  ;;  %v3254_v25 = vld [vmem:[%s5060_s3 + $0x27c] sm:$0xf]  ;;  %v3082_v27 = vor.u32 %v3380_v19, %v3079_v20  ;;  %v3317_v28 = vld [vmem:[%s5060_s3 + $0x474] sm:$0xf] }
  0xf3   :  { %v2742_v41 = vor.u32 %v3299_v33, %v2741_v32  ;;  %v3051_v32 = vld [vmem:[%s5060_s3 + $0x64c] sm:$0xf0]  ;;  %v2665_v19 = vld [vmem:[%s5060_s3 + $0x328] sm:$0xf]  ;;  %v3279_v20 = vld [vmem:[%s5060_s3 + $0x340] sm:$0xf0] }
  0xf4   :  { %1942 = vmatpush.bf16.msrb.mxu2 %v2882_v36  ;;  %v3355_v36 = vld [vmem:[%s5060_s3 + $0x5a0] sm:$0xf0] }
  0xf5   :  { %1955 = vmatpush.bf16.msrb.mxu3 %v3106_v39  ;;  %1918 = vmatpush.bf16.msrb.mxu0 %v2378_v42  ;;  %v3219_v39 = vld [vmem:[%s5060_s3 + $0x164] sm:$0xf]  ;;  %v2435_v42 = vld [vmem:[%s5060_s3 + $0x17c] sm:$0xf0] }
  0xf6   :  { %1931 = vmatpush.bf16.msrb.mxu1 %v2602_v45  ;;  %v2966_v45 = vor.u32 %v3355_v36, %v2965_v35  ;;  %v2438_v54 = vor.u32 %v3219_v39, %v2435_v42  ;;  %v2323_v35 = vld [vmem:[%s5060_s3 + $0x9c] sm:$0xf0]  ;;  %v2830_v36 = vor.u32 %v3317_v28, %v2827_v29  ;;  %v3054_v39 = vor.u32 %v3373_v31, %v3051_v32 }
  0xf7   :  { %v3141_v29 = vld [vmem:[%s5060_s3 + $0x6e0] sm:$0xf]  ;;  %v2666_v31 = vor.u32 %v3279_v20, %v2665_v19 }
  0xf8   :  { %1943 = vmatpush.bf16.msrb.mxu2 %v2854_v49  ;;  %v2937_v49 = vld [vmem:[%s5060_s3 + $0x550] sm:$0xf] }
  0xf9   :  { %1956 = vmatpush.bf16.msrb.mxu3 %v3078_v52  ;;  %1919 = vmatpush.bf16.msrb.mxu0 %v2350_v56  ;;  %v2911_v52 = vld [vmem:[%s5060_s3 + $0x534] sm:$0xf0]  ;;  %v2938_v61 = vor.u32 %v3348_v50, %v2937_v49  ;;  %v3240_v50 = vld [vmem:[%s5060_s3 + $0x20c] sm:$0xf] }
  0xfa   :  { %1932 = vmatpush.bf16.msrb.mxu1 %v2574_v59  ;;  %v3135_v56 = vld [vmem:[%s5060_s3 + $0x6f4] sm:$0xf0]  ;;  %v3212_v59 = vld [vmem:[%s5060_s3 + $0x12c] sm:$0xf] }
  0xfc   :  { %1944 = vmatpush.bf16.msrb.mxu2 %v2826_v62  ;;  %v2914_v62 = vor.u32 %v3338_v51, %v2911_v52  ;;  %v2519_v51 = vld [vmem:[%s5060_s3 + $0x224] sm:$0xf0]  ;;  %v3026_v52 = vor.u32 %v3366_v43, %v3023_v44  ;;  %v3391_v44 = vld [vmem:[%s5060_s3 + $0x6c0] sm:$0xf0] }
  0xfd   :  { %1957 = vmatpush.bf16.msrb.mxu3 %v3050_v1  ;;  %1920 = vmatpush.bf16.msrb.mxu0 %v2322_v4  ;;  %v3138_v1 = vor.u32 %v3394_v55, %v3135_v56  ;;  %v2410_v4 = vor.u32 %v3212_v59, %v2407_v60  ;;  %v2771_v55 = vld [vmem:[%s5060_s3 + $0x41c] sm:$0xf0]  ;;  %v2298_v56 = vor.u32 %v3184_v46, %v2295_v47  ;;  %v3177_v59 = vld [vmem:[%s5060_s3 + $0x14] sm:$0xf]  ;;  %v3113_v43 = vld [vmem:[%s5060_s3 + $0x6a8] sm:$0xf] }
  0xfe   :  { %1933 = vmatpush.bf16.msrb.mxu1 %v2546_v7  ;;  %v2634_v7 = vor.u32 %v3268_v63, %v2631_v0  ;;  %v2522_v60 = vor.u32 %v3240_v50, %v2519_v51  ;;  %v2491_v63 = vld [vmem:[%s5060_s3 + $0x1ec] sm:$0xf0]  ;;  %v2385_v46 = vld [vmem:[%s5060_s3 + $0xf8] sm:$0xf]  ;;  %v3209_v47 = vld [vmem:[%s5060_s3 + $0x110] sm:$0xf0] }
  0xff   :  { %v2609_v50 = vld [vmem:[%s5060_s3 + $0x2b8] sm:$0xf]  ;;  %v3265_v51 = vld [vmem:[%s5060_s3 + $0x2d0] sm:$0xf0] }
 0x100   :  { %1945 = vmatpush.bf16.msrb.mxu2 %v2798_v10  ;;  %v2886_v10 = vor.u32 %v3331_v2, %v2883_v3  ;;  %v3230_v2 = vld [vmem:[%s5060_s3 + $0x1b8] sm:$0xf0]  ;;  %v2693_v3 = vld [vmem:[%s5060_s3 + $0x360] sm:$0xf] }
 0x101   :  { %1958 = vmatpush.bf16.msrb.mxu3 %v3022_v14  ;;  %1921 = vmatpush.bf16.msrb.mxu0 %v2294_v18  ;;  %v3110_v14 = vor.u32 %v3387_v5, %v3107_v6  ;;  %v2382_v18 = vor.u32 %v3205_v8, %v2379_v9  ;;  %v3286_v5 = vld [vmem:[%s5060_s3 + $0x378] sm:$0xf0]  ;;  %v3296_v6 = vld [vmem:[%s5060_s3 + $0x3cc] sm:$0xf] }
 0x102   :  { %1934 = vmatpush.bf16.msrb.mxu1 %v2518_v22  ;;  %v3198_v22 = vld [vmem:[%s5060_s3 + $0xbc] sm:$0xf]  ;;  %v3352_v9 = vld [vmem:[%s5060_s3 + $0x58c] sm:$0xf]  ;;  %v2694_v15 = vor.u32 %v3286_v5, %v2693_v3  ;;  %v2833_v5 = vld [vmem:[%s5060_s3 + $0x478] sm:$0xf] }
 0x103   :  { %v3258_v3 = vld [vmem:[%s5060_s3 + $0x298] sm:$0xf0] }
 0x104   :  { %1946 = vmatpush.bf16.msrb.mxu2 %v2770_v26  ;;  %v2575_v26 = vld [vmem:[%s5060_s3 + $0x294] sm:$0xf0] }
 0x105   :  { %1959 = vmatpush.bf16.msrb.mxu3 %v2994_v30  ;;  %1922 = vmatpush.bf16.msrb.mxu0 %v2266_v34  ;;  %v2354_v30 = vor.u32 %v3198_v22, %v2351_v23  ;;  %v2578_v33 = vor.u32 %v3254_v25, %v2575_v26  ;;  %v3191_v34 = vld [vmem:[%s5060_s3 + $0x84] sm:$0xf]  ;;  %v3289_v22 = vld [vmem:[%s5060_s3 + $0x394] sm:$0xf]  ;;  %v2715_v23 = vld [vmem:[%s5060_s3 + $0x3ac] sm:$0xf0] }
 0x106   :  { %1935 = vmatpush.bf16.msrb.mxu1 %v2490_v37  ;;  %v3247_v37 = vld [vmem:[%s5060_s3 + $0x244] sm:$0xf]  ;;  %v2326_v42 = vor.u32 %v3191_v34, %v2323_v35  ;;  %v2939_v25 = vld [vmem:[%s5060_s3 + $0x56c] sm:$0xf0]  ;;  %v2917_v26 = vld [vmem:[%s5060_s3 + $0x520] sm:$0xf]  ;;  %v2718_v32 = vor.u32 %v3289_v22, %v2715_v23 }
 0x107   :  { %v3216_v34 = vld [vmem:[%s5060_s3 + $0x148] sm:$0xf0]  ;;  %v3314_v22 = vld [vmem:[%s5060_s3 + $0x458] sm:$0xf0] }
 0x108   :  { %1947 = vmatpush.bf16.msrb.mxu2 %v2742_v41  ;;  %1923 = vmatmul.bf16.vlgmr.msrb.gmra.mxu0 %v4051_v48  ;;  %v2799_v41 = vld [vmem:[%s5060_s3 + $0x454] sm:$0xf0] }
 0x109   :  { %1967 = vmatpush.bf16.msra.mxu0 %v2466_v38  ;;  %1960 = vmatpush.bf16.msrb.mxu3 %v2966_v45  ;;  %v2547_v38 = vld [vmem:[%s5060_s3 + $0x25c] sm:$0xf0] }
 0x10a   :  { %1980 = vmatpush.bf16.msra.mxu1 %v2690_v40  ;;  %v3310_v40 = vld [vmem:[%s5060_s3 + $0x43c] sm:$0xf]  ;;  %v2550_v45 = vor.u32 %v3247_v37, %v2547_v38  ;;  %v2637_v37 = vld [vmem:[%s5060_s3 + $0x2f0] sm:$0xf]  ;;  %v3272_v38 = vld [vmem:[%s5060_s3 + $0x308] sm:$0xf0] }
 0x10b   :  { %1936 = vmatmul.bf16.vlgmr.msrb.gmra.mxu1 %v4059_v53  ;;  %v2802_v49 = vor.u32 %v3310_v40, %v2799_v41  ;;  %v2889_v40 = vld [vmem:[%s5060_s3 + $0x4e8] sm:$0xf]  ;;  %v3335_v41 = vld [vmem:[%s5060_s3 + $0x500] sm:$0xf0] }
 0x10c   :  { %1948 = vmatpush.bf16.msrb.mxu2 %v2714_v58  ;;  %v2995_v58 = vld [vmem:[%s5060_s3 + $0x5dc] sm:$0xf0] }
 0x10d   :  { %1968 = vmatpush.bf16.msra.mxu0 %v2438_v54  ;;  %1961 = vmatpush.bf16.msrb.mxu3 %v2938_v61  ;;  %v3303_v54 = vld [vmem:[%s5060_s3 + $0x404] sm:$0xf]  ;;  %v2267_v61 = vld [vmem:[%s5060_s3 + $0x2c] sm:$0xf0] }
 0x10e   :  { %1981 = vmatpush.bf16.msra.mxu1 %v2662_v57  ;;  %v3359_v57 = vld [vmem:[%s5060_s3 + $0x5c4] sm:$0xf]  ;;  %v2774_v0 = vor.u32 %v3303_v54, %v2771_v55  ;;  %v2270_v8 = vor.u32 %v3177_v59, %v2267_v61  ;;  %v3114_v54 = vor.u32 %v3391_v44, %v3113_v43  ;;  %v2861_v55 = vld [vmem:[%s5060_s3 + $0x4b0] sm:$0xf]  ;;  %v2273_v44 = vld [vmem:[%s5060_s3 + $0x18] sm:$0xf] }
 0x10f   :  { %1949 = vmatmul.bf16.vlgmr.msrb.gmra.mxu2 %v4093_v11  ;;  %v3085_v59 = vld [vmem:[%s5060_s3 + $0x670] sm:$0xf]  ;;  %v4926_v61 = vld [vmem:[%s5063_s4] sm:$0x7f] }
 0x110   :  { %1993 = vmatpush.bf16.msra.mxu2 %v2914_v62  ;;  %1962 = vmatmul.bf16.vlgmr.msrb.gmra.mxu3 %v4104_v17  ;;  %v3233_v62 = vld [vmem:[%s5060_s3 + $0x1d4] sm:$0xf] }
 0x111   :  { %2006 = vmatpush.bf16.msra.mxu3 %v3138_v1  ;;  %1969 = vmatpush.bf16.msra.mxu0 %v2410_v4  ;;  %v2469_v1 = vld [vmem:[%s5060_s3 + $0x1a0] sm:$0xf]  ;;  %v2998_v4 = vor.u32 %v3359_v57, %v2995_v58  ;;  %v2494_v12 = vor.u32 %v3233_v62, %v2491_v63  ;;  %v2386_v58 = vor.u32 %v3209_v47, %v2385_v46  ;;  %v2497_v47 = vld [vmem:[%s5060_s3 + $0x1d8] sm:$0xf] }
 0x112   :  { %1982 = vmatpush.bf16.msra.mxu1 %v2634_v7  ;;  %v2743_v7 = vld [vmem:[%s5060_s3 + $0x3e4] sm:$0xf0]  ;;  %v2470_v13 = vor.u32 %v3230_v2, %v2469_v1  ;;  %v2610_v62 = vor.u32 %v3265_v51, %v2609_v50  ;;  %v2357_v63 = vld [vmem:[%s5060_s3 + $0xc0] sm:$0xf] }
 0x113   :  { %v2746_v16 = vor.u32 %v3296_v6, %v2743_v7  ;;  %v2581_v2 = vld [vmem:[%s5060_s3 + $0x280] sm:$0xf]  ;;  %v3321_v6 = vld [vmem:[%s5060_s3 + $0x490] sm:$0xf0]  ;;  %v541_v7 = vperm.slane %v4926_v61, 0 }
 0x114   :  { %1994 = vmatpush.bf16.msra.mxu2 %v2886_v10  ;;  %v2967_v10 = vld [vmem:[%s5060_s3 + $0x5a4] sm:$0xf0] }
 0x115   :  { %2007 = vmatpush.bf16.msra.mxu3 %v3110_v14  ;;  %1970 = vmatpush.bf16.msra.mxu0 %v2382_v18  ;;  %v2441_v14 = vld [vmem:[%s5060_s3 + $0x168] sm:$0xf]  ;;  %v3223_v18 = vld [vmem:[%s5060_s3 + $0x180] sm:$0xf0] }
 0x116   :  { %1983 = vmatpush.bf16.msra.mxu1 %v2606_v21  ;;  %v2970_v21 = vor.u32 %v3352_v9, %v2967_v10  ;;  %v2442_v28 = vor.u32 %v3223_v18, %v2441_v14  ;;  %v3057_v9 = vld [vmem:[%s5060_s3 + $0x638] sm:$0xf]  ;;  %v3377_v10 = vld [vmem:[%s5060_s3 + $0x650] sm:$0xf0]  ;;  %v3195_v14 = vld [vmem:[%s5060_s3 + $0xa0] sm:$0xf0] }
 0x117   :  { %v3251_v18 = vld [vmem:[%s5060_s3 + $0x260] sm:$0xf0]  ;;  %v3058_v20 = vor.u32 %v3377_v10, %v3057_v9 }
 0x118   :  { %1995 = vmatpush.bf16.msra.mxu2 %v2858_v24  ;;  %v3345_v24 = vld [vmem:[%s5060_s3 + $0x554] sm:$0xf] }
 0x119   :  { %2008 = vmatpush.bf16.msra.mxu3 %v3082_v27  ;;  %1971 = vmatpush.bf16.msra.mxu0 %v2354_v30  ;;  %v3342_v27 = vld [vmem:[%s5060_s3 + $0x538] sm:$0xf0]  ;;  %v2942_v35 = vor.u32 %v3345_v24, %v2939_v25 }
 0x11a   :  { %1984 = vmatpush.bf16.msra.mxu1 %v2578_v33  ;;  %v3398_v30 = vld [vmem:[%s5060_s3 + $0x6f8] sm:$0xf0]  ;;  %v2413_v33 = vld [vmem:[%s5060_s3 + $0x130] sm:$0xf] }
 0x11c   :  { %1996 = vmatpush.bf16.msra.mxu2 %v2830_v36  ;;  %v2918_v36 = vor.u32 %v3342_v27, %v2917_v26  ;;  %v3029_v26 = vld [vmem:[%s5060_s3 + $0x600] sm:$0xf]  ;;  %v3370_v27 = vld [vmem:[%s5060_s3 + $0x618] sm:$0xf0] }
 0x11d   :  { %2009 = vmatpush.bf16.msra.mxu3 %v3054_v39  ;;  %1972 = vmatpush.bf16.msra.mxu0 %v2326_v42  ;;  %v3142_v39 = vor.u32 %v3398_v30, %v3141_v29  ;;  %v2414_v42 = vor.u32 %v3216_v34, %v2413_v33  ;;  %v2301_v29 = vld [vmem:[%s5060_s3 + $0x50] sm:$0xf]  ;;  %v3188_v30 = vld [vmem:[%s5060_s3 + $0x68] sm:$0xf0]  ;;  %v3030_v34 = vor.u32 %v3370_v27, %v3029_v26 }
 0x11e   :  { %1985 = vmatpush.bf16.msra.mxu1 %v2550_v45  ;;  %v2638_v45 = vor.u32 %v3272_v38, %v2637_v37  ;;  %v3244_v33 = vld [vmem:[%s5060_s3 + $0x228] sm:$0xf0] }
 0x120   :  { %1997 = vmatpush.bf16.msra.mxu2 %v2802_v49  ;;  %v2890_v49 = vor.u32 %v3335_v41, %v2889_v40  ;;  %v3001_v40 = vld [vmem:[%s5060_s3 + $0x5c8] sm:$0xf]  ;;  %v3363_v41 = vld [vmem:[%s5060_s3 + $0x5e0] sm:$0xf0] }
 0x121   :  { %2010 = vmatpush.bf16.msra.mxu3 %v3026_v52  ;;  %1973 = vmatpush.bf16.msra.mxu0 %v2298_v56  ;;  %v3328_v56 = vld [vmem:[%s5060_s3 + $0x4c8] sm:$0xf0]  ;;  %v3002_v51 = vor.u32 %v3363_v41, %v3001_v40 }
 0x122   :  { %1986 = vmatpush.bf16.msra.mxu1 %v2522_v60  ;;  %v3384_v60 = vld [vmem:[%s5060_s3 + $0x688] sm:$0xf0]  ;;  %v2862_v1 = vor.u32 %v3328_v56, %v2861_v55 }
 0x124   :  { %1998 = vmatpush.bf16.msra.mxu2 %v2774_v0  ;;  %v1716_v52 = vpop.f32.mrf.mxu0  ;;  %v3202_v0 = vld [vmem:[%s5060_s3 + $0xd8] sm:$0xf0] }
 0x125   :  { %2011 = vmatpush.bf16.msra.mxu3 %v2998_v4  ;;  %1974 = vmatpush.bf16.msra.mxu0 %v2270_v8  ;;  %v1729_v57 = vpop.f32.mrf.mxu1  ;;  %v3086_v4 = vor.u32 %v3384_v60, %v3085_v59  ;;  %v2358_v8 = vor.u32 %v3202_v0, %v2357_v63  ;;  %v1717_v23 = vadd.f32 %v1716_v52, %v541_v7  ;;  %v2749_v52 = vld [vmem:[%s5060_s3 + $0x3d0] sm:$0xf]  ;;  %v3356_v59 = vld [vmem:[%s5060_s3 + $0x5a8] sm:$0xf0]  ;;  %v542_v63 = vperm.slane %v4926_v61, 1 }
 0x126   :  { %1987 = vmatpush.bf16.msra.mxu1 %v2494_v12  ;;  %v2582_v12 = vor.u32 %v3258_v3, %v2581_v2  ;;  %v3293_v2 = vld [vmem:[%s5060_s3 + $0x3b0] sm:$0xf0] }
 0x127   :  { %v1730_v37 = vadd.f32 %v1729_v57, %v1717_v23 }
 0x128   :  { %1999 = vmatpush.bf16.msra.mxu2 %v2746_v16  ;;  %1975 = vmatmul.bf16.vlgmr.msra.gmra.mxu0 %v4051_v48  ;;  %v2553_v16 = vld [vmem:[%s5060_s3 + $0x248] sm:$0xf] }
 0x129   :  { %2019 = vmatpush.bf16.msrb.mxu0 %v2470_v13  ;;  %2012 = vmatpush.bf16.msra.mxu3 %v2970_v21  ;;  %v2329_v13 = vld [vmem:[%s5060_s3 + $0x88] sm:$0xf]  ;;  %v2805_v21 = vld [vmem:[%s5060_s3 + $0x440] sm:$0xf] }
 0x12a   :  { %2032 = vmatpush.bf16.msrb.mxu1 %v2694_v15  ;;  %v2834_v15 = vor.u32 %v3321_v6, %v2833_v5  ;;  %v2330_v25 = vor.u32 %v3195_v14, %v2329_v13  ;;  %v2945_v5 = vld [vmem:[%s5060_s3 + $0x558] sm:$0xf]  ;;  %v3349_v6 = vld [vmem:[%s5060_s3 + $0x570] sm:$0xf0] }
 0x12b   :  { %1988 = vmatmul.bf16.vlgmr.msra.gmra.mxu1 %v4059_v53 }
 0x12c   :  { %2000 = vmatpush.bf16.msra.mxu2 %v2718_v32  ;;  %v1718_v19 = vpop.f32.mrf.mxu0  ;;  %v2525_v32 = vld [vmem:[%s5060_s3 + $0x210] sm:$0xf] }
 0x12d   :  { %2020 = vmatpush.bf16.msrb.mxu0 %v2442_v28  ;;  %2013 = vmatpush.bf16.msra.mxu3 %v2942_v35  ;;  %v1731_v24 = vpop.f32.mrf.mxu1  ;;  %v2554_v28 = vor.u32 %v3251_v18, %v2553_v16  ;;  %v2777_v35 = vld [vmem:[%s5060_s3 + $0x408] sm:$0xf]  ;;  %v2526_v43 = vor.u32 %v3244_v33, %v2525_v32  ;;  %v543_v33 = vperm.slane %v4926_v61, 2 }
 0x12e   :  { %2033 = vmatpush.bf16.msrb.mxu1 %v2666_v31  ;;  %v2806_v31 = vor.u32 %v3314_v22, %v2805_v21 }
 0x12f   :  { %2001 = vmatmul.bf16.vlgmr.msra.gmra.mxu2 %v4093_v11 }
 0x130   :  { %2045 = vmatpush.bf16.msrb.mxu2 %v2918_v36  ;;  %2014 = vmatmul.bf16.vlgmr.msra.gmra.mxu3 %v4104_v17  ;;  %v3307_v36 = vld [vmem:[%s5060_s3 + $0x420] sm:$0xf0] }
 0x131   :  { %2058 = vmatpush.bf16.msrb.mxu3 %v3142_v39  ;;  %2021 = vmatpush.bf16.msrb.mxu0 %v2414_v42  ;;  %v2302_v39 = vor.u32 %v3188_v30, %v2301_v29  ;;  %v2778_v46 = vor.u32 %v3307_v36, %v2777_v35 }
 0x132   :  { %2034 = vmatpush.bf16.msrb.mxu1 %v2638_v45  ;;  %v1742_v38 = vpop.f32.mrf.mxu2  ;;  %v3181_v45 = vld [vmem:[%s5060_s3 + $0x30] sm:$0xf0] }
 0x133   :  { %v1755_v42 = vpop.f32.mrf.mxu3  ;;  %v1743_v55 = vadd.f32 %v1742_v38, %v1730_v37  ;;  %v2274_v57 = vor.u32 %v3181_v45, %v2273_v44 }
 0x134   :  { %2046 = vmatpush.bf16.msrb.mxu2 %v2890_v49  ;;  %v3237_v49 = vld [vmem:[%s5060_s3 + $0x1f0] sm:$0xf0]  ;;  %v1768_v50 = vpop.f32.mrf.mxu0 }
 0x135   :  { %2059 = vmatpush.bf16.msrb.mxu3 %v3114_v54  ;;  %2022 = vmatpush.bf16.msrb.mxu0 %v2386_v58  ;;  %v3300_v54 = vld [vmem:[%s5060_s3 + $0x3e8] sm:$0xf0]  ;;  %v1781_v56 = vpop.f32.mrf.mxu1  ;;  %v2973_v58 = vld [vmem:[%s5060_s3 + $0x590] sm:$0xf]  ;;  %v2498_v60 = vor.u32 %v3237_v49, %v2497_v47  ;;  %v1756_v3 = vadd.f32 %v1755_v42, %v1743_v55  ;;  %v1769_v9 = vadd.f32 %v1768_v50, %v542_v63 }
 0x136   :  { %2035 = vmatpush.bf16.msrb.mxu1 %v2610_v62  ;;  %v2750_v62 = vor.u32 %v3300_v54, %v2749_v52  ;;  %v2974_v0 = vor.u32 %v3356_v59, %v2973_v58 }
 0x137   :  { %v2071_v13 = vsub.f32 0.0, %v1756_v3 }
 0x138   :  { %2047 = vmatpush.bf16.msrb.mxu2 %v2862_v1  ;;  %v2721_v1 = vld [vmem:[%s5060_s3 + $0x398] sm:$0xf] }
 0x139   :  { %2060 = vmatpush.bf16.msrb.mxu3 %v3086_v4  ;;  %2023 = vmatpush.bf16.msrb.mxu0 %v2358_v8  ;;  %v2722_v8 = vor.u32 %v3293_v2, %v2721_v1  ;;  %v2078_v16 = vmul.f32 1.442695, %v2071_v13 }
 0x13a   :  { %2036 = vmatpush.bf16.msrb.mxu1 %v2582_v12  ;;  %v1744_v4 = vpop.f32.mrf.mxu2  ;;  %v2946_v12 = vor.u32 %v3349_v6, %v2945_v5 }
 0x13b   :  { %v1757_v7 = vpop.f32.mrf.mxu3  ;;  %3399 = vpow2.f32 %v2078_v16 }
 0x13c   :  { %2048 = vmatpush.bf16.msrb.mxu2 %v2834_v15  ;;  %v1770_v10 = vpop.f32.mrf.mxu0  ;;  %v1782_v15 = vadd.f32 %v1781_v56, %v1769_v9 }
 0x13d   :  { %2061 = vmatpush.bf16.msrb.mxu3 %v3058_v20  ;;  %2024 = vmatpush.bf16.msrb.mxu0 %v2330_v25  ;;  %v1783_v14 = vpop.f32.mrf.mxu1 }
 0x13e   :  { %2037 = vmatpush.bf16.msrb.mxu1 %v2554_v28 }
 0x140   :  { %2049 = vmatpush.bf16.msrb.mxu2 %v2806_v31 }
 0x141   :  { %2062 = vmatpush.bf16.msrb.mxu3 %v3030_v34  ;;  %2025 = vmatpush.bf16.msrb.mxu0 %v2302_v39  ;;  %v3400_v26 = vpop.eup %3399 }
 0x142   :  { %2038 = vmatpush.bf16.msrb.mxu1 %v2526_v43  ;;  %v1794_v18 = vpop.f32.mrf.mxu2  ;;  %v2092_v28 = vadd.f32 1.0, %v3400_v26  ;;  %v544_v43 = vperm.slane %v4926_v61, 3 }
 0x143   :  { %v1795_v19 = vadd.f32 %v1794_v18, %v1782_v15  ;;  %v1807_v20 = vpop.f32.mrf.mxu3 }
 0x144   :  { %2050 = vmatpush.bf16.msrb.mxu2 %v2778_v46 }
 0x145   :  { %2063 = vmatpush.bf16.msrb.mxu3 %v3002_v51  ;;  %2026 = vmatpush.bf16.msrb.mxu0 %v2274_v57  ;;  %v1808_v21 = vadd.f32 %v1807_v20, %v1795_v19 }
 0x146   :  { %2039 = vmatpush.bf16.msrb.mxu1 %v2498_v60 }
 0x147   :  { %v2072_v22 = vsub.f32 0.0, %v1808_v21  ;;  %v546_v21 = vperm.slane %v4926_v61, 5 }
 0x148   :  { %2051 = vmatpush.bf16.msrb.mxu2 %v2750_v62  ;;  %2027 = vmatmul.bf16.vlgmr.msrb.gmra.mxu0 %v4051_v48  ;;  %v1820_v48 = vpop.f32.mrf.mxu0  ;;  %v1833_v23 = vpop.f32.mrf.mxu1 }
 0x149   :  { %2064 = vmatpush.bf16.msrb.mxu3 %v2974_v0  ;;  %2040 = vmatmul.bf16.vlgmr.msrb.gmra.mxu1 %v4059_v53  ;;  %v2080_v24 = vmul.f32 1.442695, %v2072_v22  ;;  %v1821_v38 = vadd.f32 %v1820_v48, %v543_v33 }
 0x14a   :  { %v1796_v25 = vpop.f32.mrf.mxu2 }
 0x14b   :  { %3401 = vpow2.f32 %v2080_v24  ;;  %v1809_v53 = vpop.f32.mrf.mxu3  ;;  %v1834_v39 = vadd.f32 %v1833_v23, %v1821_v38 }
 0x14c   :  { %2052 = vmatpush.bf16.msrb.mxu2 %v2722_v8  ;;  %3403 = vrcp.f32 %v2092_v28 }
 0x14d   :  { %2065 = vmatpush.bf16.msrb.mxu3 %v2946_v12  ;;  %v545_v12 = vperm.slane %v4926_v61, 4 }
 0x14f   :  { %2053 = vmatmul.bf16.vlgmr.msrb.gmra.mxu2 %v4093_v11 }
 0x150   :  { %2066 = vmatmul.bf16.vlgmr.msrb.gmra.mxu3 %v4104_v17  ;;  %v1822_v27 = vpop.f32.mrf.mxu0  ;;  %v1835_v29 = vpop.f32.mrf.mxu1 }
 0x151   :  { %v3402_v30 = vpop.eup %3401 }
 0x152   :  { %v2093_v31 = vadd.f32 1.0, %v3402_v30  ;;  %v1846_v32 = vpop.f32.mrf.mxu2  ;;  %v3404_v17 = vpop.eup %3403 }
 0x153   :  { %v1859_v11 = vpop.f32.mrf.mxu3  ;;  %v1847_v40 = vadd.f32 %v1846_v32, %v1834_v39  ;;  %v547_v39 = vperm.slane %v4926_v61, 6 }
 0x154   :  { %3405 = vrcp.f32 %v2093_v31 }
 0x155   :  { %v1860_v44 = vadd.f32 %v1859_v11, %v1847_v40 }
 0x157   :  { %v2073_v46 = vsub.f32 0.0, %v1860_v44 }
 0x159   :  { %v2082_v51 = vmul.f32 1.442695, %v2073_v46 }
 0x15a   :  { %v3406_v34 = vpop.eup %3405  ;;  %v1848_v36 = vpop.f32.mrf.mxu2 }
 0x15b   :  { %v2106_v35 = vpack.c.bf16 %v3406_v34, %v3404_v17  ;;  %v1861_v37 = vpop.f32.mrf.mxu3  ;;  %3407 = vpow2.f32 %v2082_v51 }
 0x15d   :  { %2110 = vst [vmem:[%s5064_s5] sm:$0xff] %v2106_v35 }
 0x161   :  { %v3408_v62 = vpop.eup %3407 }
 0x162   :  { %v2094_v63 = vadd.f32 1.0, %v3408_v62 }
 0x165   :  { %v1872_v41 = vpop.f32.mrf.mxu0 }
 0x166   :  { %v1873_v45 = vadd.f32 %v1872_v41, %v544_v43 }
 0x168   :  { %v1885_v42 = vpop.f32.mrf.mxu1 }
 0x169   :  { %v1886_v50 = vadd.f32 %v1885_v42, %v1873_v45 }
 0x16d   :  { %v1874_v47 = vpop.f32.mrf.mxu0 }
 0x170   :  { %v1887_v49 = vpop.f32.mrf.mxu1 }
 0x172   :  { %v1898_v52 = vpop.f32.mrf.mxu2 }
 0x173   :  { %v1899_v54 = vadd.f32 %v1898_v52, %v1886_v50  ;;  %v1911_v55 = vpop.f32.mrf.mxu3 }
 0x175   :  { %v1912_v56 = vadd.f32 %v1911_v55, %v1899_v54 }
 0x177   :  { %v2074_v57 = vsub.f32 0.0, %v1912_v56 }
 0x179   :  { %v2084_v58 = vmul.f32 1.442695, %v2074_v57 }
 0x17a   :  { %v1900_v59 = vpop.f32.mrf.mxu2 }
 0x17b   :  { %3409 = vpow2.f32 %v2084_v58  ;;  %v1913_v60 = vpop.f32.mrf.mxu3 }
 0x17c   :  { %3411 = vrcp.f32 %v2094_v63 }
 0x181   :  { %v3410_v0 = vpop.eup %3409 }
 0x182   :  { %v2095_v1 = vadd.f32 1.0, %v3410_v0  ;;  %v3412_v4 = vpop.eup %3411 }
 0x184   :  { %3413 = vrcp.f32 %v2095_v1 }
 0x185   :  { %v1924_v2 = vpop.f32.mrf.mxu0 }
 0x186   :  { %v1925_v15 = vadd.f32 %v1924_v2, %v545_v12 }
 0x188   :  { %v1937_v3 = vpop.f32.mrf.mxu1 }
 0x189   :  { %v1938_v16 = vadd.f32 %v1937_v3, %v1925_v15 }
 0x18a   :  { %v3414_v5 = vpop.eup %3413 }
 0x18b   :  { %v2107_v6 = vpack.c.bf16 %v3414_v5, %v3412_v4 }
 0x18d   :  { %v1926_v7 = vpop.f32.mrf.mxu0  ;;  %2111 = vst [vmem:[%s5064_s5 + $0x8] sm:$0xff] %v2107_v6 }
 0x190   :  { %v1939_v8 = vpop.f32.mrf.mxu1 }
 0x192   :  { %v1950_v9 = vpop.f32.mrf.mxu2 }
 0x193   :  { %v1963_v10 = vpop.f32.mrf.mxu3  ;;  %v1951_v18 = vadd.f32 %v1950_v9, %v1938_v16 }
 0x195   :  { %v1964_v48 = vadd.f32 %v1963_v10, %v1951_v18 }
 0x197   :  { %v2075_v23 = vsub.f32 0.0, %v1964_v48 }
 0x199   :  { %v2086_v26 = vmul.f32 1.442695, %v2075_v23 }
 0x19a   :  { %v1952_v13 = vpop.f32.mrf.mxu2 }
 0x19b   :  { %v1965_v14 = vpop.f32.mrf.mxu3  ;;  %3415 = vpow2.f32 %v2086_v26 }
 0x1a1   :  { %v3416_v33 = vpop.eup %3415 }
 0x1a2   :  { %v2096_v34 = vadd.f32 1.0, %v3416_v33 }
 0x1a5   :  { %v1976_v19 = vpop.f32.mrf.mxu0 }
 0x1a6   :  { %v1977_v22 = vadd.f32 %v1976_v19, %v546_v21 }
 0x1a8   :  { %v1989_v20 = vpop.f32.mrf.mxu1 }
 0x1a9   :  { %v1990_v53 = vadd.f32 %v1989_v20, %v1977_v22 }
 0x1ad   :  { %v1978_v24 = vpop.f32.mrf.mxu0 }
 0x1b0   :  { %v1991_v25 = vpop.f32.mrf.mxu1 }
 0x1b2   :  { %v2002_v27 = vpop.f32.mrf.mxu2 }
 0x1b3   :  { %v2003_v28 = vadd.f32 %v2002_v27, %v1990_v53  ;;  %v2015_v29 = vpop.f32.mrf.mxu3 }
 0x1b5   :  { %v2016_v30 = vadd.f32 %v2015_v29, %v2003_v28 }
 0x1b7   :  { %v2076_v31 = vsub.f32 0.0, %v2016_v30 }
 0x1b9   :  { %v2088_v32 = vmul.f32 1.442695, %v2076_v31 }
 0x1ba   :  { %v2004_v11 = vpop.f32.mrf.mxu2 }
 0x1bb   :  { %3417 = vpow2.f32 %v2088_v32  ;;  %v2017_v17 = vpop.f32.mrf.mxu3 }
 0x1bc   :  { %3419 = vrcp.f32 %v2096_v34 }
 0x1c1   :  { %v3418_v35 = vpop.eup %3417 }
 0x1c2   :  { %v2097_v36 = vadd.f32 1.0, %v3418_v35  ;;  %v3420_v40 = vpop.eup %3419 }
 0x1c4   :  { %3421 = vrcp.f32 %v2097_v36 }
 0x1c5   :  { %v2028_v37 = vpop.f32.mrf.mxu0 }
 0x1c6   :  { %v2041_v38 = vpop.f32.mrf.mxu1  ;;  %v2029_v42 = vadd.f32 %v2028_v37, %v547_v39 }
 0x1c8   :  { %v2042_v46 = vadd.f32 %v2041_v38, %v2029_v42 }
 0x1ca   :  { %v3422_v41 = vpop.eup %3421 }
 0x1cb   :  { %v2108_v43 = vpack.c.bf16 %v3422_v41, %v3420_v40 }
 0x1cd   :  { %v2030_v44 = vpop.f32.mrf.mxu0  ;;  %2112 = vst [vmem:[%s5064_s5 + $0x10] sm:$0xff] %v2108_v43 }
 0x1ce   :  { %v2043_v45 = vpop.f32.mrf.mxu1 }
 0x1d2   :  { %v2054_v47 = vpop.f32.mrf.mxu2 }
 0x1d3   :  { %v2055_v49 = vadd.f32 %v2054_v47, %v2042_v46  ;;  %v2067_v50 = vpop.f32.mrf.mxu3 }
 0x1d5   :  { %v2068_v51 = vadd.f32 %v2067_v50, %v2055_v49 }
 0x1d7   :  { %v2077_v52 = vsub.f32 0.0, %v2068_v51 }
 0x1d9   :  { %v2090_v54 = vmul.f32 1.442695, %v2077_v52 }
 0x1da   :  { %v2056_v55 = vpop.f32.mrf.mxu2 }
 0x1db   :  { %3423 = vpow2.f32 %v2090_v54  ;;  %v2069_v61 = vpop.f32.mrf.mxu3 }
 0x1e1   :  { %v3424_v56 = vpop.eup %3423 }
 0x1e2   :  { %v2098_v57 = vadd.f32 1.0, %v3424_v56 }
 0x1e4   :  { %3425 = vrcp.f32 %v2098_v57 }
 0x1ea   :  { %v3426_v58 = vpop.eup %3425 }
 0x1eb   :  { %v2109_v59 = vpack.c.bf16 %v3426_v58, %v3426_v58 }
 0x1ed   :  { %2114 = vst.msk [vmem:[%s5064_s5 + $0x18] sm:$0xf] %vm2113_vm0, %v2109_v59 }

</bundles_post_ra>
